<compile_context>
chip_gen: v7x
topology: tpu7x:2x2x1
jax: 0.10.0
libtpu: 0.0.40
codegen_flags: <defaults>
</compile_context>

<pallas_src>
import jax
import jax.numpy as jnp
from jax.experimental import pallas as pl
from jax.experimental.pallas import tpu as pltpu


def _round_up(a, b):
    return (a + b - 1) // b * b


def _pick_tile(dp):
    """Largest output-column tile that (a) divides Dp, (b) is a multiple of 128,
    (c) keeps nj = Dp/tile >= 2 (dual TensorCore on v7x), and (d) keeps the
    double-buffered bf16 W block (2 * tile * Dp * 2 B) under ~24 MiB so it fits
    v7x's 32 MiB default-scoped / 64 MiB physical VMEM with headroom."""
    budget = 24 * 1024 * 1024
    best = 128
    t = 128
    while t <= dp // 2:
        if dp % t == 0 and 2 * t * dp * 2 <= budget:
            best = t
        t += 128
    return best


# ---------------------------------------------------------------------------
# Fused kernel: conv1d(k=3, pad=1) + ReLU prologue, then out_j = act @ Wt_j + b_j
# ---------------------------------------------------------------------------
def fused_cnn_kernel(conv_w_ref, conv_b_ref, x_ref, w_ref, b_ref, out_ref):
    # --- Conv1d(k=3, zero pad) + ReLU (recomputed per grid step; negligible) ---
    x = x_ref[...]                                    # [Bp, Dp] f32, VMEM-resident
    dp = x.shape[1]
    col = jax.lax.broadcasted_iota(jnp.int32, (1, dp), 1)        # (1, Dp) edge iota
    # Lane rotations (XLU) with boundary masks emulating the Conv1d zero padding.
    x_prev = jnp.where(col == 0, 0.0, pltpu.roll(x, shift=1, axis=1))            # x[d-1]
    x_next = jnp.where(col == dp - 1, 0.0, pltpu.roll(x, shift=dp - 1, axis=1))  # x[d+1]
    w0 = conv_w_ref[0]
    w1 = conv_w_ref[1]
    w2 = conv_w_ref[2]
    act = jnp.maximum(w0 * x_prev + w1 * x + w2 * x_next + conv_b_ref[0], 0.0)
    act = act.astype(jnp.bfloat16)                    # half the MXU operand bytes

    # --- Linear: canonical [M,K] @ [K,N] full-K MXU pass, bias in the store ---
    out_ref[...] = (
        jnp.dot(act, w_ref[...], preferred_element_type=jnp.float32)
        + b_ref[...]
    ).astype(out_ref.dtype)


# ---------------------------------------------------------------------------
# Parameter init / one-time layout prep / wrapper
# ---------------------------------------------------------------------------
def init_params(key, input_dim):
    """PyTorch-default-like init for Conv1d(1,1,3) and Linear(D, D)."""
    ks = jax.random.split(key, 4)
    cb = 1.0 / jnp.sqrt(jnp.float32(3.0))             # conv fan_in = 1*3
    lb = 1.0 / jnp.sqrt(jnp.float32(input_dim))       # linear fan_in = D
    u = lambda k, shape, bnd: jax.random.uniform(k, shape, jnp.float32, -bnd, bnd)
    return {
        "conv_w": u(ks[0], (1, 1, 3), cb),            # [out_ch, in_ch, k]
        "conv_b": u(ks[1], (1,), cb),
        "fc_w": u(ks[2], (input_dim, input_dim), lb),  # [out, in]
        "fc_b": u(ks[3], (input_dim,), lb),
    }


def prepare_params(params, input_dim):
    """One-time prep (outside the hot path): pad D up to a multiple of 512,
    transpose the Linear weight to [in, out] and cast to bf16.  Padded rows /
    columns of the weight and bias are zero so padded activation garbage is
    annihilated in the matmul."""
    d = input_dim
    dp = _round_up(d, 512)                            # keep tiles >= 256-wide
    tile = _pick_tile(dp)
    w = params["fc_w"].astype(jnp.float32)            # [out, in]
    b = params["fc_b"].astype(jnp.float32)
    wt_pad = jnp.zeros((dp, dp), jnp.float32).at[:d, :d].set(w.T)   # [in, out]
    b_pad = jnp.zeros((1, dp), jnp.float32).at[0, :d].set(b)
    return {
        "conv_w": params["conv_w"].reshape(3).astype(jnp.float32),
        "conv_b": params["conv_b"].reshape(1).astype(jnp.float32),
        "fc_wt": wt_pad.astype(jnp.bfloat16),         # W.T, bf16, padded
        "fc_b": b_pad,                                # f32, padded
        "dim": d,
        "dim_padded": dp,
        "tile": tile,
    }


def cnn_layer(x, prepared, previous_state=None):
    """Pallas-backed CNNLayer.forward.  Returns (output, None)."""
    del previous_state                                # unused, as in the module
    b = x.shape[0]
    x2 = x.reshape(b, -1).astype(jnp.float32)
    d = prepared["dim"]
    dp = prepared["dim_padded"]
    tile = prepared["tile"]
    assert x2.shape[1] == d, (x2.shape, d)
    bp = _round_up(max(b, 8), 8)
    x_pad = jnp.zeros((bp, dp), jnp.float32).at[:b, :d].set(x2)

    nj = dp // tile                                   # >= 2 (v7x dual-TC sharding)

    # Explicit VMEM budget (documents v7x headroom): double-buffered W block,
    # resident x, double-buffered out + bias, plus slack.
    needed = 2 * tile * dp * 2 + bp * dp * 4 + 2 * bp * tile * 4 + 2 * tile * 4
    vmem_limit = int(min(48 * 1024 * 1024, max(needed + (4 << 20), 16 * 1024 * 1024)))

    smem = pl.BlockSpec(memory_space=pltpu.MemorySpace.SMEM)

    out = pl.pallas_call(
        fused_cnn_kernel,
        out_shape=jax.ShapeDtypeStruct((bp, dp), jnp.float32),
        grid=(nj,),
        in_specs=[
            smem,                                         # conv weight (3,)
            smem,                                         # conv bias   (1,)
            pl.BlockSpec((bp, dp), lambda j: (0, 0)),     # x, resident across j
            pl.BlockSpec((dp, tile), lambda j: (0, j)),   # W.T block, full-K
            pl.BlockSpec((1, tile), lambda j: (0, j)),    # bias block
        ],
        out_specs=pl.BlockSpec((bp, tile), lambda j: (0, j)),
        compiler_params=pltpu.CompilerParams(
            dimension_semantics=("parallel",),
            vmem_limit_bytes=vmem_limit),
    )(prepared["conv_w"], prepared["conv_b"], x_pad,
      prepared["fc_wt"], prepared["fc_b"])

    return out[:b, :d], None


# ---------------------------------------------------------------------------
# Pure-JAX reference (mirrors the PyTorch forward in f32)
# ---------------------------------------------------------------------------
def cnn_reference(x, params):
    b = x.shape[0]
    x2 = x.reshape(b, -1).astype(jnp.float32)
    w = params["conv_w"].reshape(3)
    xp = jnp.pad(x2, ((0, 0), (1, 1)))
    conv = (w[0] * xp[:, :-2] + w[1] * xp[:, 1:-1] + w[2] * xp[:, 2:]
            + params["conv_b"][0])
    act = jnp.maximum(conv, 0.0)
    out = act @ params["fc_w"].T + params["fc_b"]
    return out, None


if __name__ == "__main__":
    key = jax.random.PRNGKey(0)
    kx, kp = jax.random.split(key)

    # x: [B, C, H, W] = [2, 4, 16, 16]  ->  flattened input_dim D = 1024
    x = jax.random.normal(kx, (2, 4, 16, 16), dtype=jnp.float32)
    input_dim = 4 * 16 * 16
    params = init_params(kp, input_dim)
    prepared = prepare_params(params, input_dim)      # one-time, outside hot path

    out, state = cnn_layer(x, prepared)
    jax.block_until_ready(out)

    out_ref, _ = cnn_reference(x, params)
    assert state is None
    assert out.shape == out_ref.shape
    # bf16 weights/activations on the MXU (f32 accumulate) -> loosened tolerance.
    assert jnp.allclose(out, out_ref, atol=2e-2, rtol=2e-2), float(
        jnp.max(jnp.abs(out - out_ref)))

    # Exercise the previous_state=None default path explicitly (module signature).
    out2, state2 = cnn_layer(x, prepared, previous_state=None)
    jax.block_until_ready(out2)
    assert state2 is None

    print("KERNEL_OK")
</pallas_src>

<mosaic_0001>
module attributes {stable_mosaic.version = 11 : i64} {
  func.func @fused_cnn_kernel(%arg0: i32, %arg1: memref<3xf32, #tpu.memory_space<smem>>, %arg2: memref<1xf32, #tpu.memory_space<smem>>, %arg3: memref<8x1024xf32, #tpu.memory_space<vmem>>, %arg4: memref<1024x512xbf16, #tpu.memory_space<vmem>>, %arg5: memref<1x512xf32, #tpu.memory_space<vmem>>, %arg6: memref<8x512xf32, #tpu.memory_space<vmem>>) attributes {dimension_semantics = [#tpu.dimension_semantics<parallel>], iteration_bounds = array<i64: 2>, scalar_prefetch = 0 : i64, scratch_operands = 0 : i64, tpu.core_type = #tpu.core_type<tc>, window_params = [{transform_indices = @transform_0, window_bounds = array<i64: 3>}, {transform_indices = @transform_1, window_bounds = array<i64: 1>}, {pipeline_mode = #tpu.pipeline_mode<synchronous>, transform_indices = @transform_2, window_bounds = array<i64: 8, 1024>}, {transform_indices = @transform_3, window_bounds = array<i64: 1024, 512>}, {transform_indices = @transform_4, window_bounds = array<i64: 1, 512>}, {transform_indices = @transform_5, window_bounds = array<i64: 8, 512>}]} {
    %c0 = arith.constant 0 : index
    %c0_0 = arith.constant 0 : index
    %0 = vector.load %arg3[%c0, %c0_0] : memref<8x1024xf32, #tpu.memory_space<vmem>>, vector<8x1024xf32>
    %1 = tpu.iota {dimensions = array<i32: 1>} : vector<1x1024xi32>
    %c0_i32 = arith.constant 0 : i32
    %2 = vector.broadcast %c0_i32 : i32 to vector<1x1024xi32>
    %3 = arith.cmpi eq, %1, %2 : vector<1x1024xi32>
    %c1_i32 = arith.constant 1 : i32
    %4 = tpu.dynamic_rotate %0 by %c1_i32 dim 1 : vector<8x1024xf32>, i32 -> vector<8x1024xf32>
    %cst = arith.constant 0.000000e+00 : f32
    %5 = vector.shape_cast %3 : vector<1x1024xi1> to vector<1x1024xi1>
    %6 = vector.broadcast %5 : vector<1x1024xi1> to vector<8x1024xi1>
    %7 = vector.broadcast %cst : f32 to vector<8x1024xf32>
    %8 = arith.select %6, %7, %4 : vector<8x1024xi1>, vector<8x1024xf32>
    %c1023_i32 = arith.constant 1023 : i32
    %9 = vector.broadcast %c1023_i32 : i32 to vector<1x1024xi32>
    %10 = arith.cmpi eq, %1, %9 : vector<1x1024xi32>
    %c1023_i32_1 = arith.constant 1023 : i32
    %11 = tpu.dynamic_rotate %0 by %c1023_i32_1 dim 1 : vector<8x1024xf32>, i32 -> vector<8x1024xf32>
    %cst_2 = arith.constant 0.000000e+00 : f32
    %12 = vector.shape_cast %10 : vector<1x1024xi1> to vector<1x1024xi1>
    %13 = vector.broadcast %12 : vector<1x1024xi1> to vector<8x1024xi1>
    %14 = vector.broadcast %cst_2 : f32 to vector<8x1024xf32>
    %15 = arith.select %13, %14, %11 : vector<8x1024xi1>, vector<8x1024xf32>
    %c0_3 = arith.constant 0 : index
    %16 = memref.load %arg1[%c0_3] : memref<3xf32, #tpu.memory_space<smem>>
    %c1 = arith.constant 1 : index
    %17 = memref.load %arg1[%c1] : memref<3xf32, #tpu.memory_space<smem>>
    %c2 = arith.constant 2 : index
    %18 = memref.load %arg1[%c2] : memref<3xf32, #tpu.memory_space<smem>>
    %19 = vector.broadcast %16 : f32 to vector<8x1024xf32>
    %20 = arith.mulf %19, %8 : vector<8x1024xf32>
    %21 = vector.broadcast %17 : f32 to vector<8x1024xf32>
    %22 = arith.mulf %21, %0 : vector<8x1024xf32>
    %23 = arith.addf %20, %22 : vector<8x1024xf32>
    %24 = vector.broadcast %18 : f32 to vector<8x1024xf32>
    %25 = arith.mulf %24, %15 : vector<8x1024xf32>
    %26 = arith.addf %23, %25 : vector<8x1024xf32>
    %c0_4 = arith.constant 0 : index
    %27 = memref.load %arg2[%c0_4] : memref<1xf32, #tpu.memory_space<smem>>
    %28 = vector.broadcast %27 : f32 to vector<8x1024xf32>
    %29 = arith.addf %26, %28 : vector<8x1024xf32>
    %cst_5 = arith.constant 0.000000e+00 : f32
    %30 = vector.broadcast %cst_5 : f32 to vector<8x1024xf32>
    %31 = arith.maximumf %29, %30 : vector<8x1024xf32>
    %32 = arith.truncf %31 : vector<8x1024xf32> to vector<8x1024xbf16>
    %c0_6 = arith.constant 0 : index
    %c0_7 = arith.constant 0 : index
    %33 = vector.load %arg4[%c0_6, %c0_7] : memref<1024x512xbf16, #tpu.memory_space<vmem>>, vector<1024x512xbf16>
    %cst_8 = arith.constant dense<0.000000e+00> : vector<8x512xf32>
    %34 = tpu.matmul %32, %33, %cst_8 {dimension_numbers = #tpu.dot_dimension_numbers<[1], [0], [0], [1], [0, 0, 1, 1], [], []>} : vector<8x1024xbf16>, vector<1024x512xbf16>, vector<8x512xf32> -> vector<8x512xf32>
    %c0_9 = arith.constant 0 : index
    %c0_10 = arith.constant 0 : index
    %35 = vector.load %arg5[%c0_9, %c0_10] : memref<1x512xf32, #tpu.memory_space<vmem>>, vector<1x512xf32>
    %36 = vector.broadcast %35 : vector<1x512xf32> to vector<8x512xf32>
    %37 = arith.addf %34, %36 : vector<8x512xf32>
    %c0_11 = arith.constant 0 : index
    %c0_12 = arith.constant 0 : index
    %38 = vector.load %arg6[%c0_11, %c0_12] : memref<8x512xf32, #tpu.memory_space<vmem>>, vector<8x512xf32>
    tpu.vector_store %arg6[%c0_11, %c0_12], %37 {strides = array<i32>} : memref<8x512xf32, #tpu.memory_space<vmem>>, vector<8x512xf32>,
    return
  }
  func.func @transform_0(%arg0: i32) -> i32 {
    %c0_i32 = arith.constant 0 : i32
    %c0_i32_0 = arith.constant 0 : i32
    return %c0_i32 : i32
  }
  func.func @transform_1(%arg0: i32) -> i32 {
    %c0_i32 = arith.constant 0 : i32
    %c0_i32_0 = arith.constant 0 : i32
    return %c0_i32 : i32
  }
  func.func @transform_2(%arg0: i32) -> (i32, i32) {
    %c0_i32 = arith.constant 0 : i32
    %c0_i32_0 = arith.constant 0 : i32
    %c0_i32_1 = arith.constant 0 : i32
    return %c0_i32, %c0_i32_0 : i32, i32
  }
  func.func @transform_3(%arg0: i32) -> (i32, i32) {
    %c0_i32 = arith.constant 0 : i32
    %c0_i32_0 = arith.constant 0 : i32
    return %c0_i32, %arg0 : i32, i32
  }
  func.func @transform_4(%arg0: i32) -> (i32, i32) {
    %c0_i32 = arith.constant 0 : i32
    %c0_i32_0 = arith.constant 0 : i32
    return %c0_i32, %arg0 : i32, i32
  }
  func.func @transform_5(%arg0: i32) -> (i32, i32) {
    %c0_i32 = arith.constant 0 : i32
    %c0_i32_0 = arith.constant 0 : i32
    return %c0_i32, %arg0 : i32, i32
  }
}

</mosaic_0001>

<bundles_post_ra>
// kernel: tpu_custom_call.1
= control target key start
LH: loop header
LB: loop body
LE: loop exit
PB: predicated region body
PF: predicated region fallthrough
CT: control target
= control target key end

     0   :  { %s4211_s0 = inlined_call_operand.hbm [shape: f32[3], index: 0, kind: input, shape index: {}]   ;;  %s4212_s1 = inlined_call_operand.<no memory space> [shape: f32[1], index: 1, kind: input, shape index: {}]   ;;  %s4213_s2 = inlined_call_operand.hbm [shape: f32[8,1024], index: 2, kind: input, shape index: {}]   ;;  %s4214_s3 = inlined_call_operand.hbm [shape: bf16[1024,1024], index: 3, kind: input, shape index: {}]   ;;  %s4215_s4 = inlined_call_operand.hbm [shape: f32[1,1024], index: 4, kind: input, shape index: {}]   ;;  %s4216_s5 = inlined_call_operand.hbm [shape: f32[8,1024], index: 5, kind: output, shape index: {}]  }
   0x1   :  { %4221 = sst [smem:[#allocation17_spill]] %s4214_s3 }
   0x2   :  { %10 = sst [smem:[#allocation2]] %s4212_s1 }
   0x3   :  { %11 = vsyncpa [#allocation6], 0 }
   0x4   :  { %12 = vsyncpa [#allocation4], 0 }
   0x5   :  { %13 = vsyncpa [#allocation9], 0 }
   0x6   :  { %15 = vsyncpa [#allocation9 + $0x1], 0 }
   0x7   :  { %16 = vsyncpa [#allocation5], 0 }
   0x8   :  { %18 = vsyncpa [#allocation5 + $0x1], 0  ;;  %s3521_s20 = smov 0   ;;  %s3523_s21 = smov 0  }
   0x9   :  { %s3525_s22 = smov 0   ;;  %s3527_s23 = smov 0  }
   0xa LB: > { %s3542_s1 = sadd.s32 1, %s3476_s23   ;;  %s94_s24 = sadd.s32 1, %s3472_s22  ;;  %s3476_s23 = sphi %s3527_s23, %s4244_s23   ;;  %s3472_s22 = sphi %s3525_s22, %s4243_s22   ;;  %s3468_s21 = sphi %s3523_s21, %s4242_s21   ;;  %s3464_s20 = sphi %s3521_s20, %s4241_s20  }
   0xb   : > { %s91_s25 = ssub.s32 %s3476_s23, %s3542_s1  ;;  %p101_p0 = scmp.ne.s32.totalorder %s3472_s22, %s3468_s21 }
   0xc   : > { %p92_p1 = scmp.eq.s32.totalorder %s91_s25, 0  ;;  %p102_p2 = scmp.eq.s32.totalorder %s3476_s23, 0 }
   0xd   : > { %p2874_p4 = scmp.lt.s32.totalorder %s3476_s23, 2  ;;  %s206_s27 = sand.u32 1, %s3476_s23  }
   0xe   : > { %s3553_s26 = scalar_select %p92_p1, %s3472_s22, %s94_s24  }
   0xf   : > { %p103_p5 = por %p102_p2, %p101_p0  ;;  %s208_s28 = sand.u32 1, %s3472_s22  }
  0x10   : > { %4222 = sst [smem:[#allocation16_spill]] %s3553_s26  ;;  %s2534_s29 = sshll.u32 %s208_s28, 11 }
  0x11   : > { %s2809_s30 = sshll.u32 %s3476_s23, 8  ;;  %s4223_s3 = sld [smem:[#allocation17_spill]] }
  0x12   : > { %s210_s9 = scalar_lea.vmem [#allocation8], %s2534_s29  ;;  %p3568_p6 = pnand %p2874_p4, %p103_p5 }
  0x13   : > { %s217_s10 = sshll.u32 %s210_s9, 4  ;;  %s3574_s12 = scalar_lea.sflag [#allocation9], %s206_s27  ;;  %s3572_s10 = int_to_ptr.vmem [resolvable:$true] %s217_s10 }
  0x14   : > { %p4218_p8 = pneg %p3568_p6 }
  0x17   : > { %s3566_s8 = scalar_lea.hbm %s4223_s3, %s2809_s30  ;;  %s3306_s16 = scalar_lea.hbm %s4223_s3, 65536 }
  0x18   : > { %s3301_s13 = scalar_lea.hbm %s3566_s8, 32768  ;;  %p3307_p11 = scmp.lt.u32.totalorder %s3566_s8, %s4223_s3 }
  0x19   : > { %p3302_p7 = scmp.ne.s32.totalorder %s3566_s8, %s3301_s13  ;;  %p3308_p12 = scmp.lt.u32.totalorder %s3306_s16, %s3301_s13 }
  0x1a   : > { %p3310_p1 = scmp.lt.u32.totalorder %s3301_s13, %s3566_s8 }
  0x1b   : > { %p3304_p9 = pnand %p4218_p8, %p3302_p7  ;;  %p3309_p13 = por %p3308_p12, %p3307_p11 }
  0x1d   : > { %p3305_p10 = pneg %p3304_p9  ;;  %p3311_p2 = por %p3310_p1, %p3309_p13 }
  0x1f   : > { %p3312_p4 = pnand %p3311_p2, %p3305_p10 }
  0x21   : > { %3315 = shalt.err (!%p3312_p4)
}
  0x22   : > { %s3316_s19 = scalar_lea.vmem %s3572_s10, 32768  ;;  %s3478_s24 = smov [#allocation8]  }
  0x23   : > { %p3317_p5 = scmp.ne.s32.totalorder %s3572_s10, %s3316_s19  ;;  %s3321_s25 = sshll.u32 %s3478_s24, 4  ;;  %s3322_s25 = int_to_ptr.vmem [resolvable:$false] %s3321_s25 }
  0x24   : > { %s3323_s27 = scalar_lea.vmem %s3322_s25, 65536  ;;  %p3324_p3 = scmp.lt.s32.totalorder %s3572_s10, %s3322_s25 }
  0x25   : > { %p3319_p7 = pnand %p3317_p5, %p4218_p8  ;;  %p3325_p11 = scmp.lt.s32.totalorder %s3323_s27, %s3316_s19 }
  0x27   : > { %p3320_p9 = pneg %p3319_p7  ;;  %p3326_p12 = por %p3325_p11, %p3324_p3 }
  0x29   : > { %p3327_p13 = pnand %p3326_p12, %p3320_p9 }
  0x2b   : > { %3330 = shalt.err (!%p3327_p13)
}
  0x2c   : > { %s3479_s29 = smov 512   ;;  %s3480_s30 = smov 256  }
  0x2d   : > { %s3481_s6 = smov 16   ;;  %s3603_s7 = sadd.s32 4294967295, %s3476_s23  }
  0x2e   : > { %2864 = dma.hbm_to_vmem [thread:$0]  (!%p3568_p6), %s3566_s8, 32768, %s3572_s10, %s3574_s12, %s3479_s29, %s3480_s30, %s3481_s6  }
  0x2f   : > { %s2529_s9 = sadd.s32 4294967294, %s3476_s23   ;;  %p107_p3 = scmp.ne.s32.totalorder %s3468_s21, %s3464_s20 }
  0x30   : > { %p4217_p10 = scmp.eq.s32.totalorder %s3603_s7, 0  ;;  %p157_p1 = scmp.eq.s32.totalorder %s3603_s7, 1 }
  0x31   : > { %p163_p2 = scmp.eq.s32.totalorder %s2529_s9, 1  ;;  %p2530_p4 = scmp.ge.s32.totalorder %s3476_s23, 1 }
  0x32   : > { %p3613_p5 = por %p4217_p10, %p107_p3  ;;  %p3620_p7 = por %p157_p1, %p101_p0 }
  0x33   : > { %p3624_p9 = por %p163_p2, %p107_p3  ;;  %p170_p11 = scmp.lt.s32.totalorder %s3476_s23, 3 }
  0x34   : > { %s4225_s13 = scalar_select %p3613_p5, 1, 0 }
  0x35   : > { %s4226_s8 = scalar_select %p3620_p7, 1, 0 }
  0x36   : > { %s4227_s10 = scalar_select %p3624_p9, 1, 0 }
  0x37   : > { %p3629_p12 = pnand %p2530_p4, %p170_p11  ;;  %s3482_s15 = smov [#allocation7]  }
  0x38   : > { %s195_s16 = sshll.u32 %s3482_s15, 4  ;;  %s2537_s17 = sshll.u32 %s208_s28, 2  ;;  %s3644_s16 = int_to_ptr.vmem [resolvable:$true] %s195_s16 }
  0x39   : > { %p2854_p13 = pneg %p3629_p12  ;;  %s2810_s18 = sshll.u32 %s3476_s23, 6 }
  0x3a   : > { %s3649_s27 = scalar_lea.hbm %s4215_s4, %s2810_s18  ;;  %s231_s29 = scalar_lea.vmem [#allocation10], %s2537_s17 }
  0x3b   : > { %p3640_p0 = pnand %p2854_p13, %p4217_p10  ;;  %s239_s30 = sshll.u32 %s231_s29, 4  ;;  %s3651_s30 = int_to_ptr.vmem [resolvable:$true] %s239_s30 }
  0x3c   : > { %s3331_s9 = scalar_lea.hbm %s4211_s0, 16 }
  0x3d   : > { %p3332_p3 = scmp.ne.s32.totalorder %s4211_s0, %s3331_s9  ;;  %p3333_p1 = pneg %p3640_p0 }
  0x3e   : > { %p3338_p11 = scmp.lt.u32.totalorder %s3331_s9, %s4211_s0 }
  0x3f   : > { %p3334_p2 = pnand %p3333_p1, %p3332_p3 }
  0x41   : > { %p3335_p4 = pneg %p3334_p2 }
  0x43   : > { %p3340_p13 = pnand %p3338_p11, %p3335_p4 }
  0x45   : > { %3343 = shalt.err (!%p3340_p13)
}
  0x46   : > { %s3483_s17 = smov [#allocation3]   ;;  %s3344_s6 = scalar_lea.hbm %s4213_s2, 1024 }
  0x47   : > { %2857 = dma.hbm_to_smem (!%p3640_p0), %s4211_s0, 16, %s3483_s17, [#allocation6]  }
  0x48   : > { %p3345_p3 = scmp.ne.s32.totalorder %s4213_s2, %s3344_s6  ;;  %p3351_p11 = scmp.lt.u32.totalorder %s3344_s6, %s4213_s2 }
  0x4a   : > { %p3347_p2 = pnand %p3345_p3, %p3333_p1 }
  0x4c   : > { %p3348_p4 = pneg %p3347_p2 }
  0x4e   : > { %p3353_p13 = pnand %p3351_p11, %p3348_p4 }
  0x50   : > { %3356 = shalt.err (!%p3353_p13)
}
  0x51   : > { %s3357_s24 = scalar_lea.vmem %s3644_s16, 1024  ;;  %p3365_p7 = scmp.lt.s32.totalorder %s3644_s16, %s3644_s16 }
  0x52   : > { %p3358_p10 = scmp.ne.s32.totalorder %s3644_s16, %s3357_s24  ;;  %p3366_p3 = scmp.lt.s32.totalorder %s3357_s24, %s3357_s24 }
  0x54   : > { %p3360_p8 = pnand %p3358_p10, %p3333_p1  ;;  %p3367_p2 = por %p3366_p3, %p3365_p7 }
  0x56   : > { %p3361_p9 = pneg %p3360_p8 }
  0x58   : > { %p3368_p5 = pnand %p3367_p2, %p3361_p9 }
  0x5a   : > { %3371 = shalt.err (!%p3368_p5)
}
  0x5b   : > { %2860 = dma.hbm_to_vmem [thread:$0]  (!%p3640_p0), %s4213_s2, 1024, %s3644_s16, [#allocation4]  }
  0x5c   : > { %s3372_s25 = scalar_lea.hbm %s3649_s27, 64  ;;  %p4230_p10 = pneg %p3568_p6 }
  0x5d   : > { %p3373_p8 = scmp.ne.s32.totalorder %s3649_s27, %s3372_s25  ;;  %s3377_s19 = scalar_lea.hbm %s4215_s4, 128 }
  0x5e   : > { %p3378_p5 = scmp.lt.u32.totalorder %s3649_s27, %s4215_s4  ;;  %p3379_p9 = scmp.lt.u32.totalorder %s3377_s19, %s3372_s25 }
  0x5f   : > { %p3375_p1 = pnand %p3373_p8, %p4230_p10  ;;  %p3381_p11 = scmp.lt.u32.totalorder %s3372_s25, %s3649_s27 }
  0x60   : > { %p3380_p4 = por %p3379_p9, %p3378_p5 }
  0x61   : > { %p3376_p7 = pneg %p3375_p1 }
  0x62   : > { %p3382_p13 = por %p3381_p11, %p3380_p4 }
  0x64   : > { %p3383_p3 = pnand %p3382_p13, %p3376_p7 }
  0x66   : > { %3386 = shalt.err (!%p3383_p3)
}
  0x67   : > { %s3387_s16 = scalar_lea.vmem %s3651_s30, 64  ;;  %p4231_p2 = pmov %p4230_p10 }
  0x68   : > { %p3388_p0 = scmp.ne.s32.totalorder %s3651_s30, %s3387_s16  ;;  %s3484_s15 = smov [#allocation10]  }
  0x69   : > { %s3392_s9 = sshll.u32 %s3484_s15, 4  ;;  %s3393_s9 = int_to_ptr.vmem [resolvable:$false] %s3392_s9 }
  0x6a   : > { %p3390_p8 = pnand %p3388_p0, %p4231_p2  ;;  %s3394_s18 = scalar_lea.vmem %s3393_s9, 128 }
  0x6b   : > { %p3395_p1 = scmp.lt.s32.totalorder %s3651_s30, %s3393_s9  ;;  %p3396_p5 = scmp.lt.s32.totalorder %s3394_s18, %s3387_s16 }
  0x6c   : > { %p3391_p10 = pneg %p3390_p8 }
  0x6d   : > { %p3397_p9 = por %p3396_p5, %p3395_p1 }
  0x6f   : > { %p3398_p4 = pnand %p3397_p9, %p3391_p10 }
  0x71   : > { %3401 = shalt.err (!%p3398_p4)
}
  0x72   : > { %2867 = dma.hbm_to_vmem [thread:$0]  (!%p3568_p6), %s3649_s27, 64, %s3651_s30, %s3574_s12  }
  0x73   : > { %248 = sbr.rel (%p3629_p12) target bundleno = 692 (0x2b4), region = 40  ;;  %p4232_p7 = scmp.eq.s32.totalorder (!%p3629_p12), %s3603_s7, 0 }
  0x7a   : > { %3447 = dma.done.wait (%p4232_p7), [#allocation6], 16   ;;  %p4233_p11 = pmov %p4232_p7 }
  0x7b   : > { %p4234_p13 = pmov %p4232_p7 }
  0x7c   : > { %3449 = vsyncadd (%p4233_p11), [#allocation6], 4294967280 }
  0x7d   : > { %3451 = dma.done.wait (%p4234_p13), [#allocation4], 1024   ;;  %p4235_p3 = pmov %p4232_p7 }
  0x7e   : > { %s258_s11 = sand.u32 1, %s3603_s7   ;;  %s3733_s12 = sand.u32 1, %s3468_s21  }
  0x7f   : > { %3453 = vsyncadd (%p4235_p3), [#allocation4], 4294966272  ;;  %s2543_s14 = sshll.u32 %s3733_s12, 11  ;;  %s259_s27 = scalar_lea.sflag [#allocation9], %s258_s11 }
  0x80   : > { %s3736_s30 = scalar_lea.vmem [#allocation8], %s2543_s14  ;;  %p4236_p6 = scmp.ne.s32.totalorder %s4225_s13, 0 }
  0x82   : > { %3455 = dma.done.wait (%p4236_p6), %s259_s27, 32832  }
  0x83   : > { %3457 = vsyncadd (%p4236_p6), %s259_s27, 4294934464  ;;  %s2544_s24 = sshll.u32 %s3733_s12, 2 }
  0x84   : > { %s3743_s26 = scalar_lea.vmem [#allocation10], %s2544_s24 }
  0x85   : > { %276 = sfence }
  0x86   : > { %v3745_v0 = vld [vmem:[#allocation7 + $0x38] sm:$0xff]  ;;  %s2546_s17 = sld [smem:[#allocation3 + $0x1]]  ;;  %v3747_v1 = vld [vmem:[#allocation7] sm:$0xff]  ;;  %s3485_s25 = smov 1   ;;  %v3753_v2 = vld [vmem:[#allocation7 + $0x8] sm:$0xff] }
  0x87   : > { %346 = vrot.lane.b32.xlu1 %v3745_v0, %s3485_s25  ;;  %332 = vrot.lane.b32.xlu0 %v3747_v1, %s3485_s25  ;;  %v2917_v3 = vld [vmem:[%s3736_s30 + $0x4] ss:$16 sps:$4 sm:$0xff]   ;;  %v2919_v5 = vld [vmem:[%s3736_s30 + $0xc] ss:$16 sps:$4 sm:$0xff]   ;;  %s3486_s13 = smov 127   ;;  %s438_s29 = sld [smem:[#allocation3]] }
  0x88   : > { %v309_v4 = vld [vmem:[#allocation7 + $0x10] sm:$0xff]  ;;  %v311_v7 = vld [vmem:[#allocation7 + $0x20] sm:$0xff]  ;;  %v312_v8 = vld [vmem:[#allocation7 + $0x28] sm:$0xff]  ;;  %2068 = vmatprep.subr.bf16.mxu0 %v2917_v3  ;;  %2232 = vmatprep.subr.bf16.mxu1 %v2919_v5  ;;  %s2547_s3 = sld [smem:[#allocation3 + $0x2]]  ;;  %s484_s19 = sld [smem:[#allocation2]] }
  0x89   : > { %v2921_v6 = vld [vmem:[%s3736_s30] ss:$16 sps:$4 sm:$0xff]   ;;  %v2922_v10 = vld [vmem:[%s3736_s30 + $0x8] ss:$16 sps:$4 sm:$0xff]   ;;  %v2923_v12 = vld [vmem:[%s3736_s30 + $0x24] ss:$16 sps:$4 sm:$0xff]  }
  0x8a   : > { %v3762_v9 = vld [vmem:[#allocation7 + $0x30] sm:$0xff]  ;;  %2069 = vmatpush1.bf16.msra.mxu0 %v2921_v6  ;;  %v2925_v15 = vld [vmem:[%s3736_s30 + $0x2c] ss:$16 sps:$4 sm:$0xff]   ;;  %2233 = vmatpush1.bf16.msra.mxu1 %v2922_v10  ;;  %v2928_v20 = vld [vmem:[%s3736_s30 + $0x28] ss:$16 sps:$4 sm:$0xff]   ;;  %s2545_s28 = sshll.u32 %s3733_s12, 5 }
  0x8b   : > { %391 = vrot.lane.b32.xlu1 %v3753_v2, %s3486_s13  ;;  %334 = vrot.lane.b32.xlu0 %v3753_v2, %s3485_s25  ;;  %v2927_v16 = vld [vmem:[%s3736_s30 + $0x20] ss:$16 sps:$4 sm:$0xff]   ;;  %v3791_v21 = vld [vmem:[#allocation7 + $0x18] sm:$0xff]  ;;  %v2929_v22 = vld [vmem:[%s3736_s30 + $0x44] ss:$16 sps:$4 sm:$0xff]   ;;  %s2811_s6 = sshll.u32 %s3603_s7, 9 }
  0x8c   : > { %v3765_v11 = vstv %s2546_s17  ;;  %2070 = vmatprep.subr.bf16.mxu0 %v2923_v12  ;;  %2234 = vmatprep.subr.bf16.mxu1 %v2925_v15  ;;  %v2931_v23 = vld [vmem:[%s3736_s30 + $0x4c] ss:$16 sps:$4 sm:$0xff]   ;;  %v2933_v24 = vld [vmem:[%s3736_s30 + $0x40] ss:$16 sps:$4 sm:$0xff]   ;;  %v2934_v25 = vld [vmem:[%s3736_s30 + $0x48] ss:$16 sps:$4 sm:$0xff]   ;;  %s4167_s11 = scalar_lea.hbm %s4216_s5, %s2811_s6 }
  0x8d   : > { %v3770_v13 = vmul.f32 %v3765_v11, %v3745_v0  ;;  %v3773_v14 = vmul.f32 %v3765_v11, %v309_v4  ;;  %v3778_v17 = vmul.f32 %v3765_v11, %v311_v7  ;;  %v3781_v18 = vmul.f32 %v3765_v11, %v312_v8  ;;  %v2935_v26 = vld [vmem:[%s3736_s30 + $0x64] ss:$16 sps:$4 sm:$0xff]   ;;  %v2937_v27 = vld [vmem:[%s3736_s30 + $0x6c] ss:$16 sps:$4 sm:$0xff]   ;;  %v2939_v28 = vld [vmem:[%s3736_s30 + $0x60] ss:$16 sps:$4 sm:$0xff]  }
  0x8e   : > { %v3785_v19 = vmul.f32 %v3765_v11, %v3762_v9  ;;  %2071 = vmatpush1.bf16.msra.mxu0 %v2927_v16  ;;  %2235 = vmatpush1.bf16.msra.mxu1 %v2928_v20  ;;  %v2940_v29 = vld [vmem:[%s3736_s30 + $0x68] ss:$16 sps:$4 sm:$0xff]   ;;  %v2941_v30 = vld [vmem:[%s3736_s30 + $0x84] ss:$16 sps:$4 sm:$0xff]   ;;  %v2943_v31 = vld [vmem:[%s3736_s30 + $0x8c] ss:$16 sps:$4 sm:$0xff]  }
  0x8f   : > { %389 = vrot.lane.b32.xlu1 %v3747_v1, %s3486_s13  ;;  %393 = vrot.lane.b32.xlu0 %v309_v4, %s3486_s13  ;;  %v2945_v32 = vld [vmem:[%s3736_s30 + $0x80] ss:$16 sps:$4 sm:$0xff]   ;;  %v2946_v33 = vld [vmem:[%s3736_s30 + $0x88] ss:$16 sps:$4 sm:$0xff]   ;;  %s303_s16 = scalar_lea.vmem [#allocation11], %s2545_s28  ;;  %s2401_s7 = scalar_lea.sflag [#allocation5], %s3733_s12 }
  0x90   : > { %2072 = vmatprep.subr.bf16.mxu0 %v2929_v22  ;;  %2236 = vmatprep.subr.bf16.mxu1 %v2931_v23  ;;  %v2947_v34 = vld [vmem:[%s3736_s30 + $0xa4] ss:$16 sps:$4 sm:$0xff]   ;;  %v2949_v35 = vld [vmem:[%s3736_s30 + $0xac] ss:$16 sps:$4 sm:$0xff]   ;;  %v2951_v36 = vld [vmem:[%s3736_s30 + $0xa0] ss:$16 sps:$4 sm:$0xff]  }
  0x91   : > { %v2952_v37 = vld [vmem:[%s3736_s30 + $0xa8] ss:$16 sps:$4 sm:$0xff]   ;;  %v2953_v38 = vld [vmem:[%s3736_s30 + $0xc4] ss:$16 sps:$4 sm:$0xff]   ;;  %v2955_v39 = vld [vmem:[%s3736_s30 + $0xcc] ss:$16 sps:$4 sm:$0xff]  }
  0x92   : > { %2073 = vmatpush1.bf16.msra.mxu0 %v2933_v24  ;;  %2237 = vmatpush1.bf16.msra.mxu1 %v2934_v25  ;;  %v2957_v40 = vld [vmem:[%s3736_s30 + $0xc0] ss:$16 sps:$4 sm:$0xff]   ;;  %v2958_v41 = vld [vmem:[%s3736_s30 + $0xc8] ss:$16 sps:$4 sm:$0xff]   ;;  %v2959_v42 = vld [vmem:[%s3736_s30 + $0xe4] ss:$16 sps:$4 sm:$0xff]   ;;  %v315_v25 = vlaneseq }
  0x93   : > { %338 = vrot.lane.b32.xlu1 %v3791_v21, %s3485_s25  ;;  %336 = vrot.lane.b32.xlu0 %v309_v4, %s3485_s25  ;;  %v2961_v43 = vld [vmem:[%s3736_s30 + $0xec] ss:$16 sps:$4 sm:$0xff]   ;;  %v2963_v44 = vld [vmem:[%s3736_s30 + $0xe0] ss:$16 sps:$4 sm:$0xff]   ;;  %s2415_s15 = sshll.u32 %s303_s16, 4  ;;  %p4237_p0 = scmp.ne.s32.totalorder %s4226_s8, 0  ;;  %s4169_s15 = int_to_ptr.vmem [resolvable:$true] %s2415_s15 }
  0x94   : > { %2074 = vmatprep.subr.bf16.mxu0 %v2935_v26  ;;  %2238 = vmatprep.subr.bf16.mxu1 %v2937_v27  ;;  %v2964_v45 = vld [vmem:[%s3736_s30 + $0xe8] ss:$16 sps:$4 sm:$0xff]   ;;  %v2965_v46 = vld [vmem:[%s3736_s30 + $0x104] ss:$16 sps:$4 sm:$0xff]   ;;  %v2967_v47 = vld [vmem:[%s3736_s30 + $0x10c] ss:$16 sps:$4 sm:$0xff]  }
  0x95   : > { %v2969_v48 = vld [vmem:[%s3736_s30 + $0x100] ss:$16 sps:$4 sm:$0xff]   ;;  %v2970_v49 = vld [vmem:[%s3736_s30 + $0x108] ss:$16 sps:$4 sm:$0xff]   ;;  %v2971_v50 = vld [vmem:[%s3736_s30 + $0x124] ss:$16 sps:$4 sm:$0xff]  }
  0x96   : > { %2075 = vmatpush1.bf16.msra.mxu0 %v2939_v28  ;;  %2239 = vmatpush1.bf16.msra.mxu1 %v2940_v29  ;;  %v2973_v51 = vld [vmem:[%s3736_s30 + $0x12c] ss:$16 sps:$4 sm:$0xff]   ;;  %v2975_v52 = vld [vmem:[%s3736_s30 + $0x120] ss:$16 sps:$4 sm:$0xff]   ;;  %v2976_v53 = vld [vmem:[%s3736_s30 + $0x128] ss:$16 sps:$4 sm:$0xff]  }
  0x97   : > { %397 = vrot.lane.b32.xlu1 %v311_v7, %s3486_s13  ;;  %395 = vrot.lane.b32.xlu0 %v3791_v21, %s3486_s13  ;;  %v2977_v54 = vld [vmem:[%s3736_s30 + $0x144] ss:$16 sps:$4 sm:$0xff]   ;;  %v2979_v55 = vld [vmem:[%s3736_s30 + $0x14c] ss:$16 sps:$4 sm:$0xff]   ;;  %v3867_v26 = vand.u32 127, %v315_v25  ;;  %s3402_s14 = scalar_lea.vmem %s4169_s15, 512 }
  0x98   : > { %2076 = vmatprep.subr.bf16.mxu0 %v2941_v30  ;;  %2240 = vmatprep.subr.bf16.mxu1 %v2943_v31  ;;  %v2981_v56 = vld [vmem:[%s3736_s30 + $0x140] ss:$16 sps:$4 sm:$0xff]   ;;  %v2982_v57 = vld [vmem:[%s3736_s30 + $0x148] ss:$16 sps:$4 sm:$0xff]   ;;  %v2983_v58 = vld [vmem:[%s3736_s30 + $0x164] ss:$16 sps:$4 sm:$0xff]   ;;  %v3876_v30 = vstv %s438_s29  ;;  %p3403_p12 = scmp.ne.s32.totalorder %s4169_s15, %s3402_s14 }
  0x99   : > { %v2985_v59 = vld [vmem:[%s3736_s30 + $0x16c] ss:$16 sps:$4 sm:$0xff]   ;;  %v2987_v60 = vld [vmem:[%s3736_s30 + $0x160] ss:$16 sps:$4 sm:$0xff]   ;;  %v2988_v61 = vld [vmem:[%s3736_s30 + $0x168] ss:$16 sps:$4 sm:$0xff]  }
  0x9a   : > { %2077 = vmatpush1.bf16.msra.mxu0 %v2945_v32  ;;  %2241 = vmatpush1.bf16.msra.mxu1 %v2946_v33  ;;  %v2989_v62 = vld [vmem:[%s3736_s30 + $0x184] ss:$16 sps:$4 sm:$0xff]   ;;  %v2991_v63 = vld [vmem:[%s3736_s30 + $0x18c] ss:$16 sps:$4 sm:$0xff]   ;;  %v2994_v3 = vld [vmem:[%s3736_s30 + $0x188] ss:$16 sps:$4 sm:$0xff]   ;;  %p3404_p2 = pnand %p3403_p12, %p4237_p0 }
  0x9b   : > { %342 = vrot.lane.b32.xlu1 %v312_v8, %s3485_s25  ;;  %340 = vrot.lane.b32.xlu0 %v311_v7, %s3485_s25  ;;  %v2995_v4 = vld [vmem:[%s3736_s30 + $0x1a4] ss:$16 sps:$4 sm:$0xff]   ;;  %v2997_v5 = vld [vmem:[%s3736_s30 + $0x1ac] ss:$16 sps:$4 sm:$0xff]   ;;  %vm348_vm0 = vcmp.lt.s32.totalorder %v3867_v26, 1  ;;  %vm324_vm1 = vcmp.eq.s32.totalorder %v3867_v26, 0 }
  0x9c   : > { %2078 = vmatprep.subr.bf16.mxu0 %v2947_v34  ;;  %2242 = vmatprep.subr.bf16.mxu1 %v2949_v35  ;;  %v2999_v6 = vld [vmem:[%s3736_s30 + $0x1a0] ss:$16 sps:$4 sm:$0xff]   ;;  %v3000_v7 = vld [vmem:[%s3736_s30 + $0x1a8] ss:$16 sps:$4 sm:$0xff]   ;;  %v3007_v15 = vld [vmem:[%s3736_s30 + $0x1e4] ss:$16 sps:$4 sm:$0xff]   ;;  %v451_v35 = vmul.f32 %v3765_v11, %v3747_v1  ;;  %p3405_p8 = pneg %p3404_p2 }
  0x9d   : > { %v3005_v10 = vld [vmem:[%s3736_s30 + $0x1c0] ss:$16 sps:$4 sm:$0xff]   ;;  %v3006_v12 = vld [vmem:[%s3736_s30 + $0x1c8] ss:$16 sps:$4 sm:$0xff]   ;;  %v3009_v16 = vld [vmem:[%s3736_s30 + $0x1ec] ss:$16 sps:$4 sm:$0xff]  }
  0x9e   : > { %2079 = vmatpush1.bf16.msra.mxu0 %v2951_v36  ;;  %2243 = vmatpush1.bf16.msra.mxu1 %v2952_v37  ;;  %v3011_v20 = vld [vmem:[%s3736_s30 + $0x1e0] ss:$16 sps:$4 sm:$0xff]   ;;  %v3012_v22 = vld [vmem:[%s3736_s30 + $0x1e8] ss:$16 sps:$4 sm:$0xff]   ;;  %v3015_v23 = vld [vmem:[%s3736_s30 + $0x204] ss:$16 sps:$4 sm:$0xff]   ;;  %v452_v36 = vmul.f32 %v3765_v11, %v3753_v2 }
  0x9f   : > { %401 = vrot.lane.b32.xlu1 %v3762_v9, %s3486_s13  ;;  %399 = vrot.lane.b32.xlu0 %v312_v8, %s3486_s13  ;;  %v3001_v8 = vld [vmem:[%s3736_s30 + $0x1c4] ss:$16 sps:$4 sm:$0xff]   ;;  %v3018_v24 = vld [vmem:[%s3736_s30 + $0x20c] ss:$16 sps:$4 sm:$0xff]   ;;  %vm405_vm2 = vcmp.lt.s32.totalorder %v3867_v26, 127  ;;  %s3487_s27 = smov [#allocation11]  }
  0xa0   : > { %2080 = vmatprep.subr.bf16.mxu0 %v2953_v38  ;;  %2244 = vmatprep.subr.bf16.mxu1 %v2955_v39  ;;  %v3887_v39 = vstv %s2547_s3 }
  0xa2   : > { %2081 = vmatpush1.bf16.msra.mxu0 %v2957_v40  ;;  %2245 = vmatpush1.bf16.msra.mxu1 %v2958_v41 }
  0xa3   : > { %403 = vrot.lane.b32.xlu1 %v3745_v0, %s3486_s13  ;;  %344 = vrot.lane.b32.xlu0 %v3762_v9, %s3485_s25  ;;  %v2993_v0 = vld [vmem:[%s3736_s30 + $0x180] ss:$16 sps:$4 sm:$0xff]   ;;  %v3003_v9 = vld [vmem:[%s3736_s30 + $0x1cc] ss:$16 sps:$4 sm:$0xff]  }
  0xa4   : > { %2082 = vmatprep.subr.bf16.mxu0 %v2959_v42  ;;  %2246 = vmatprep.subr.bf16.mxu1 %v2961_v43 }
  0xa6   : > { %2083 = vmatpush1.bf16.msra.mxu0 %v2963_v44  ;;  %2247 = vmatpush1.bf16.msra.mxu1 %v2964_v45 }
  0xa7   : > { %2084 = vmatprep.subr.bf16.mxu0 %v2965_v46  ;;  %2248 = vmatprep.subr.bf16.mxu1 %v2967_v47  ;;  %v3898_v46 = vstv %s484_s19  ;;  %v454_v47 = vmul.f32 %v3765_v11, %v3791_v21 }
  0xaa   : > { %2085 = vmatpush1.bf16.msra.mxu0 %v2969_v48  ;;  %2249 = vmatpush1.bf16.msra.mxu1 %v2970_v49 }
  0xab   : > { %2086 = vmatprep.subr.bf16.mxu0 %v2971_v50  ;;  %2250 = vmatprep.subr.bf16.mxu1 %v2973_v51 }
  0xae   : > { %2087 = vmatpush1.bf16.msra.mxu0 %v2975_v52  ;;  %2251 = vmatpush1.bf16.msra.mxu1 %v2976_v53 }
  0xaf   : > { %2088 = vmatprep.subr.bf16.mxu0 %v2977_v54  ;;  %2252 = vmatprep.subr.bf16.mxu1 %v2979_v55 }
  0xb2   : > { %2089 = vmatpush1.bf16.msra.mxu0 %v2981_v56  ;;  %2253 = vmatpush1.bf16.msra.mxu1 %v2982_v57 }
  0xb3   : > { %2090 = vmatprep.subr.bf16.mxu0 %v2983_v58  ;;  %2254 = vmatprep.subr.bf16.mxu1 %v2985_v59 }
  0xb6   : > { %2091 = vmatpush1.bf16.msra.mxu0 %v2987_v60  ;;  %2255 = vmatpush1.bf16.msra.mxu1 %v2988_v61  ;;  %v3013_v60 = vld [vmem:[%s3736_s30 + $0x200] ss:$16 sps:$4 sm:$0xff]  }
  0xb7   : > { %2092 = vmatprep.subr.bf16.mxu0 %v2989_v62  ;;  %2256 = vmatprep.subr.bf16.mxu1 %v2991_v63 }
  0xba   : > { %2093 = vmatpush1.bf16.msra.mxu0 %v2993_v0  ;;  %2257 = vmatpush1.bf16.msra.mxu1 %v2994_v3  ;;  %v3016_v3 = vld [vmem:[%s3736_s30 + $0x208] ss:$16 sps:$4 sm:$0xff]  }
  0xbb   : > { %2094 = vmatprep.subr.bf16.mxu0 %v2995_v4  ;;  %2258 = vmatprep.subr.bf16.mxu1 %v2997_v5 }
  0xbe   : > { %2095 = vmatpush1.bf16.msra.mxu0 %v2999_v6  ;;  %2259 = vmatpush1.bf16.msra.mxu1 %v3000_v7  ;;  %v3021_v7 = vld [vmem:[%s3736_s30 + $0x224] ss:$16 sps:$4 sm:$0xff]  }
  0xbf   : > { %2096 = vmatprep.subr.bf16.mxu0 %v3001_v8  ;;  %2260 = vmatprep.subr.bf16.mxu1 %v3003_v9  ;;  %v3024_v8 = vld [vmem:[%s3736_s30 + $0x22c] ss:$16 sps:$4 sm:$0xff]  }
  0xc2   : > { %2097 = vmatpush1.bf16.msra.mxu0 %v3005_v10  ;;  %2261 = vmatpush1.bf16.msra.mxu1 %v3006_v12 }
  0xc3   : > { %2098 = vmatprep.subr.bf16.mxu0 %v3007_v15  ;;  %2262 = vmatprep.subr.bf16.mxu1 %v3009_v16  ;;  %v3019_v16 = vld [vmem:[%s3736_s30 + $0x220] ss:$16 sps:$4 sm:$0xff]  }
  0xc6   : > { %2099 = vmatpush1.bf16.msra.mxu0 %v3011_v20  ;;  %2263 = vmatpush1.bf16.msra.mxu1 %v3012_v22  ;;  %v3022_v20 = vld [vmem:[%s3736_s30 + $0x228] ss:$16 sps:$4 sm:$0xff]  }
  0xc7   : > { %2109 = vmatprep.subr.bf16.mxu0 %v3015_v23  ;;  %2273 = vmatprep.subr.bf16.mxu1 %v3018_v24 }
  0xf9   : > { %v3870_v27 = vpop.permute.xlu1 %346  ;;  %v333_v28 = vpop.permute.xlu0 %332 }
  0xfa   : > { %v356_v29 = vsel %vm348_vm0, %v3870_v27, %v333_v28 }
  0xfb   : > { %v373_v31 = vsel %vm324_vm1, 0.0, %v356_v29 }
  0xfc   : > { %v442_v37 = vmul.f32 %v3876_v30, %v373_v31  ;;  %v323_v31 = vadd.s32 896, %v3867_v26  ;;  %v3039_v26 = vld [vmem:[%s3736_s30 + $0x284] ss:$16 sps:$4 sm:$0xff]  }
  0xfd   : > { %v392_v32 = vpop.permute.xlu1 %391  ;;  %v335_v33 = vpop.permute.xlu0 %334 }
  0xfe   : > { %v355_v34 = vsel %vm348_vm0, %v333_v28, %v335_v33  ;;  %v459_v1 = vadd.f32 %v451_v35, %v442_v37  ;;  %vm388_vm3 = vcmp.eq.s32.totalorder %v323_v31, 1023  ;;  %v3072_v31 = vld [vmem:[%s3736_s30 + $0x32c] ss:$16 sps:$4 sm:$0xff]  }
  0xff   : > { %v443_v38 = vmul.f32 %v3876_v30, %v355_v34 }
 0x101   : > { %v3889_v40 = vpop.permute.xlu1 %389  ;;  %v394_v41 = vpop.permute.xlu0 %393  ;;  %v460_v44 = vadd.f32 %v452_v36, %v443_v38 }
 0x102   : > { %v412_v42 = vsel %vm405_vm2, %v3889_v40, %v392_v32  ;;  %v411_v43 = vsel %vm405_vm2, %v392_v32, %v394_v41  ;;  %v3027_v32 = vld [vmem:[%s3736_s30 + $0x244] ss:$16 sps:$4 sm:$0xff]  }
 0x103   : > { %v468_v2 = vmul.f32 %v3887_v39, %v412_v42  ;;  %v469_v45 = vmul.f32 %v3887_v39, %v411_v43  ;;  %v3028_v42 = vld [vmem:[%s3736_s30 + $0x248] ss:$16 sps:$4 sm:$0xff]  }
 0x105   : > { %v476_v48 = vadd.f32 %v468_v2, %v459_v1  ;;  %v339_v49 = vpop.permute.xlu1 %338  ;;  %v337_v50 = vpop.permute.xlu0 %336  ;;  %v477_v51 = vadd.f32 %v469_v45, %v460_v44  ;;  %v3036_v45 = vld [vmem:[%s3736_s30 + $0x26c] ss:$16 sps:$4 sm:$0xff]  }
 0x106   : > { %v353_v52 = vsel %vm348_vm0, %v337_v50, %v339_v49  ;;  %v354_v53 = vsel %vm348_vm0, %v335_v33, %v337_v50  ;;  %v3030_v33 = vld [vmem:[%s3736_s30 + $0x24c] ss:$16 sps:$4 sm:$0xff]  }
 0x107   : > { %v444_v54 = vmul.f32 %v3876_v30, %v354_v53  ;;  %v445_v55 = vmul.f32 %v3876_v30, %v353_v52  ;;  %v487_v56 = vadd.f32 %v3898_v46, %v477_v51  ;;  %v486_v11 = vadd.f32 %v3898_v46, %v476_v48  ;;  %v3031_v52 = vld [vmem:[%s3736_s30 + $0x260] ss:$16 sps:$4 sm:$0xff]   ;;  %v3034_v53 = vld [vmem:[%s3736_s30 + $0x268] ss:$16 sps:$4 sm:$0xff]  }
 0x109   : > { %v461_v21 = vadd.f32 %v3773_v14, %v444_v54  ;;  %v462_v57 = vadd.f32 %v454_v47, %v445_v55  ;;  %v398_v58 = vpop.permute.xlu1 %397  ;;  %v396_v59 = vpop.permute.xlu0 %395  ;;  %v495_v61 = vmax.f32 %v487_v56, 0.0  ;;  %v494_v62 = vmax.f32 %v486_v11, 0.0 }
 0x10a   : > { %v409_v63 = vsel %vm405_vm2, %v396_v59, %v398_v58  ;;  %v410_v0 = vsel %vm405_vm2, %v394_v41, %v396_v59  ;;  %v3025_v41 = vld [vmem:[%s3736_s30 + $0x240] ss:$16 sps:$4 sm:$0xff]  }
 0x10b   : > { %v470_v4 = vmul.f32 %v3887_v39, %v410_v0  ;;  %v471_v5 = vmul.f32 %v3887_v39, %v409_v63  ;;  %v503_v14 = vpack.c.bf16 %v495_v61, %v495_v61  ;;  %v502_v6 = vpack.c.bf16 %v494_v62, %v494_v62  ;;  %v3037_v63 = vld [vmem:[%s3736_s30 + $0x280] ss:$16 sps:$4 sm:$0xff]   ;;  %v3040_v0 = vld [vmem:[%s3736_s30 + $0x288] ss:$16 sps:$4 sm:$0xff]  }
 0x10d   : > { %v478_v9 = vadd.f32 %v470_v4, %v461_v21  ;;  %v479_v10 = vadd.f32 %v471_v5, %v462_v57  ;;  %v343_v12 = vpop.permute.xlu1 %342  ;;  %2100 = vmatprep.mubr.bf16.mxu0 %v503_v14  ;;  %2264 = vmatprep.mubr.bf16.mxu1 %v503_v14  ;;  %v341_v15 = vpop.permute.xlu0 %340  ;;  %v3045_v4 = vld [vmem:[%s3736_s30 + $0x2a4] ss:$16 sps:$4 sm:$0xff]   ;;  %v3048_v5 = vld [vmem:[%s3736_s30 + $0x2ac] ss:$16 sps:$4 sm:$0xff]   ;;  %v3043_v14 = vld [vmem:[%s3736_s30 + $0x2a0] ss:$16 sps:$4 sm:$0xff]  }
 0x10e   : > { %v351_v22 = vsel %vm348_vm0, %v341_v15, %v343_v12  ;;  %v352_v23 = vsel %vm348_vm0, %v339_v49, %v341_v15  ;;  %2101 = vmatmul.mubr.bf16.vlgmr.msra.gmra.mrb[0].mxu0 %v502_v6  ;;  %2265 = vmatmul.mubr.bf16.vlgmr.msra.gmra.mrb[0].mxu1 %v502_v6  ;;  %v3055_v15 = vld [vmem:[%s3736_s30 + $0x2e0] ss:$16 sps:$4 sm:$0xff]  }
 0x10f   : > { %v3928_v24 = vadd.f32 %v3898_v46, %v478_v9  ;;  %v446_v28 = vmul.f32 %v3876_v30, %v352_v23  ;;  %v447_v29 = vmul.f32 %v3876_v30, %v351_v22  ;;  %2110 = vmatpush1.bf16.msra.mxu0 %v3013_v60  ;;  %2274 = vmatpush1.bf16.msra.mxu1 %v3016_v3  ;;  %v3042_v60 = vld [vmem:[%s3736_s30 + $0x28c] ss:$16 sps:$4 sm:$0xff]   ;;  %v3049_v9 = vld [vmem:[%s3736_s30 + $0x2c0] ss:$16 sps:$4 sm:$0xff]  }
 0x110   : > { %2111 = vmatprep.subr.bf16.mxu0 %v3021_v7  ;;  %2275 = vmatprep.subr.bf16.mxu1 %v3024_v8  ;;  %v489_v34 = vadd.f32 %v3898_v46, %v479_v10  ;;  %v3051_v7 = vld [vmem:[%s3736_s30 + $0x2c4] ss:$16 sps:$4 sm:$0xff]   ;;  %v3054_v8 = vld [vmem:[%s3736_s30 + $0x2cc] ss:$16 sps:$4 sm:$0xff]   ;;  %v3052_v10 = vld [vmem:[%s3736_s30 + $0x2c8] ss:$16 sps:$4 sm:$0xff]  }
 0x111   : > { %v463_v35 = vadd.f32 %v3778_v17, %v446_v28  ;;  %v464_v36 = vadd.f32 %v3781_v18, %v447_v29  ;;  %v402_v37 = vpop.permute.xlu1 %401  ;;  %v400_v38 = vpop.permute.xlu0 %399  ;;  %v3033_v18 = vld [vmem:[%s3736_s30 + $0x264] ss:$16 sps:$4 sm:$0xff]   ;;  %v3066_v22 = vld [vmem:[%s3736_s30 + $0x30c] ss:$16 sps:$4 sm:$0xff]   ;;  %v3061_v23 = vld [vmem:[%s3736_s30 + $0x300] ss:$16 sps:$4 sm:$0xff]  }
 0x112   : > { %v407_v43 = vsel %vm405_vm2, %v400_v38, %v402_v37  ;;  %v408_v1 = vsel %vm405_vm2, %v398_v58, %v400_v38  ;;  %v497_v44 = vmax.f32 %v489_v34, 0.0  ;;  %v3064_v28 = vld [vmem:[%s3736_s30 + $0x308] ss:$16 sps:$4 sm:$0xff]   ;;  %v3069_v29 = vld [vmem:[%s3736_s30 + $0x324] ss:$16 sps:$4 sm:$0xff]  }
 0x113   : > { %v472_v2 = vmul.f32 %v3887_v39, %v408_v1  ;;  %v473_v17 = vmul.f32 %v3887_v39, %v407_v43  ;;  %2112 = vmatpush1.bf16.msra.mxu0 %v3019_v16  ;;  %2276 = vmatpush1.bf16.msra.mxu1 %v3022_v20  ;;  %v3058_v16 = vld [vmem:[%s3736_s30 + $0x2e8] ss:$16 sps:$4 sm:$0xff]   ;;  %v3063_v20 = vld [vmem:[%s3736_s30 + $0x304] ss:$16 sps:$4 sm:$0xff]  }
 0x114   : > { %2113 = vmatprep.subr.bf16.mxu0 %v3027_v32  ;;  %2277 = vmatprep.subr.bf16.mxu1 %v3030_v33  ;;  %v505_v47 = vpack.c.bf16 %v497_v44, %v497_v44  ;;  %v3067_v32 = vld [vmem:[%s3736_s30 + $0x320] ss:$16 sps:$4 sm:$0xff]   ;;  %v3070_v33 = vld [vmem:[%s3736_s30 + $0x328] ss:$16 sps:$4 sm:$0xff]   ;;  %v3075_v34 = vld [vmem:[%s3736_s30 + $0x344] ss:$16 sps:$4 sm:$0xff]  }
 0x115   : > { %v480_v48 = vadd.f32 %v472_v2, %v463_v35  ;;  %v481_v49 = vadd.f32 %v473_v17, %v464_v36  ;;  %v404_v50 = vpop.permute.xlu1 %403  ;;  %v345_v51 = vpop.permute.xlu0 %344  ;;  %v3078_v35 = vld [vmem:[%s3736_s30 + $0x34c] ss:$16 sps:$4 sm:$0xff]   ;;  %v3073_v36 = vld [vmem:[%s3736_s30 + $0x340] ss:$16 sps:$4 sm:$0xff]   ;;  %v3081_v38 = vld [vmem:[%s3736_s30 + $0x364] ss:$16 sps:$4 sm:$0xff]  }
 0x116   : > { %v406_v54 = vsel %vm405_vm2, %v402_v37, %v404_v50  ;;  %v413_v55 = vsel %vm405_vm2, %v404_v50, %v3889_v40  ;;  %v349_v56 = vsel %vm348_vm0, %v345_v51, %v3870_v27  ;;  %v350_v11 = vsel %vm348_vm0, %v343_v12, %v345_v51  ;;  %2141 = vmatprep.mubr.bf16.mxu0 %v505_v47  ;;  %v3057_v12 = vld [vmem:[%s3736_s30 + $0x2e4] ss:$16 sps:$4 sm:$0xff]   ;;  %v3076_v37 = vld [vmem:[%s3736_s30 + $0x348] ss:$16 sps:$4 sm:$0xff]   ;;  %v3090_v44 = vld [vmem:[%s3736_s30 + $0x38c] ss:$16 sps:$4 sm:$0xff]  }
 0x117   : > { %v3961_v21 = vadd.f32 %v3898_v46, %v480_v48  ;;  %v437_v57 = vsel %vm388_vm3, 0.0, %v413_v55  ;;  %v474_v58 = vmul.f32 %v3887_v39, %v406_v54  ;;  %v448_v59 = vmul.f32 %v3876_v30, %v350_v11  ;;  %2114 = vmatpush1.bf16.msra.mxu0 %v3025_v41  ;;  %2278 = vmatpush1.bf16.msra.mxu1 %v3028_v42  ;;  %v3084_v41 = vld [vmem:[%s3736_s30 + $0x36c] ss:$16 sps:$4 sm:$0xff]   ;;  %v3079_v42 = vld [vmem:[%s3736_s30 + $0x360] ss:$16 sps:$4 sm:$0xff]  }
 0x118   : > { %v475_v40 = vmul.f32 %v3887_v39, %v437_v57  ;;  %v449_v27 = vmul.f32 %v3876_v30, %v349_v56  ;;  %2115 = vmatprep.subr.bf16.mxu0 %v3033_v18  ;;  %2279 = vmatprep.subr.bf16.mxu1 %v3036_v45  ;;  %v3971_v61 = vadd.f32 %v3898_v46, %v481_v49  ;;  %v3082_v43 = vld [vmem:[%s3736_s30 + $0x368] ss:$16 sps:$4 sm:$0xff]   ;;  %v3087_v1 = vld [vmem:[%s3736_s30 + $0x384] ss:$16 sps:$4 sm:$0xff]   ;;  %v3085_v2 = vld [vmem:[%s3736_s30 + $0x380] ss:$16 sps:$4 sm:$0xff]  }
 0x119   : > { %v465_v62 = vadd.f32 %v3785_v19, %v448_v59  ;;  %2305 = vmatprep.mubr.bf16.mxu1 %v505_v47  ;;  %v3046_v19 = vld [vmem:[%s3736_s30 + $0x2a8] ss:$16 sps:$4 sm:$0xff]   ;;  %v3093_v18 = vld [vmem:[%s3736_s30 + $0x3a4] ss:$16 sps:$4 sm:$0xff]   ;;  %v3096_v45 = vld [vmem:[%s3736_s30 + $0x3ac] ss:$16 sps:$4 sm:$0xff]  }
 0x11a   : > { %v466_v39 = vadd.f32 %v3770_v13, %v449_v27  ;;  %v3088_v17 = vld [vmem:[%s3736_s30 + $0x388] ss:$16 sps:$4 sm:$0xff]   ;;  %v3091_v47 = vld [vmem:[%s3736_s30 + $0x3a0] ss:$16 sps:$4 sm:$0xff]   ;;  %v3099_v49 = vld [vmem:[%s3736_s30 + $0x3c4] ss:$16 sps:$4 sm:$0xff]  }
 0x11b   : > { %v482_v3 = vadd.f32 %v474_v58, %v465_v62  ;;  %2116 = vmatpush1.bf16.msra.mxu0 %v3031_v52  ;;  %2280 = vmatpush1.bf16.msra.mxu1 %v3034_v53  ;;  %v3094_v48 = vld [vmem:[%s3736_s30 + $0x3a8] ss:$16 sps:$4 sm:$0xff]   ;;  %v3102_v50 = vld [vmem:[%s3736_s30 + $0x3cc] ss:$16 sps:$4 sm:$0xff]   ;;  %v3097_v51 = vld [vmem:[%s3736_s30 + $0x3c0] ss:$16 sps:$4 sm:$0xff]  }
 0x11c   : > { %v483_v30 = vadd.f32 %v475_v40, %v466_v39  ;;  %2117 = vmatprep.subr.bf16.mxu0 %v3039_v26  ;;  %2281 = vmatprep.subr.bf16.mxu1 %v3042_v60  ;;  %v3100_v52 = vld [vmem:[%s3736_s30 + $0x3c8] ss:$16 sps:$4 sm:$0xff]   ;;  %v3105_v53 = vld [vmem:[%s3736_s30 + $0x3e4] ss:$16 sps:$4 sm:$0xff]   ;;  %v3108_v54 = vld [vmem:[%s3736_s30 + $0x3ec] ss:$16 sps:$4 sm:$0xff]  }
 0x11d   : > { %v3982_v6 = vadd.f32 %v3898_v46, %v482_v3  ;;  %v3103_v55 = vld [vmem:[%s3736_s30 + $0x3e0] ss:$16 sps:$4 sm:$0xff]   ;;  %v3106_v56 = vld [vmem:[%s3736_s30 + $0x3e8] ss:$16 sps:$4 sm:$0xff]   ;;  %v496_v11 = vmax.f32 %v3928_v24, 0.0  ;;  %v499_v59 = vmax.f32 %v3971_v61, 0.0 }
 0x11e   : > { %v3985_v13 = vadd.f32 %v3898_v46, %v483_v30  ;;  %v3060_v46 = vld [vmem:[%s3736_s30 + $0x2ec] ss:$16 sps:$4 sm:$0xff]   ;;  %v3111_v57 = vld [vmem:[%s3736_s30 + $0x404] ss:$16 sps:$4 sm:$0xff]   ;;  %v3109_v40 = vld [vmem:[%s3736_s30 + $0x400] ss:$16 sps:$4 sm:$0xff]  }
 0x11f   : > { %2118 = vmatpush1.bf16.msra.mxu0 %v3037_v63  ;;  %2282 = vmatpush1.bf16.msra.mxu1 %v3040_v0  ;;  %v3114_v58 = vld [vmem:[%s3736_s30 + $0x40c] ss:$16 sps:$4 sm:$0xff]   ;;  %v3112_v27 = vld [vmem:[%s3736_s30 + $0x408] ss:$16 sps:$4 sm:$0xff]   ;;  %v504_v26 = vpack.c.bf16 %v496_v11, %v496_v11  ;;  %v3117_v60 = vld [vmem:[%s3736_s30 + $0x424] ss:$16 sps:$4 sm:$0xff]   ;;  %v507_v24 = vpack.c.bf16 %v499_v59, %v499_v59 }
 0x120   : > { %2119 = vmatprep.subr.bf16.mxu0 %v3045_v4  ;;  %2283 = vmatprep.subr.bf16.mxu1 %v3048_v5  ;;  %v3120_v62 = vld [vmem:[%s3736_s30 + $0x42c] ss:$16 sps:$4 sm:$0xff]   ;;  %v3115_v61 = vld [vmem:[%s3736_s30 + $0x420] ss:$16 sps:$4 sm:$0xff]   ;;  %v3118_v63 = vld [vmem:[%s3736_s30 + $0x428] ss:$16 sps:$4 sm:$0xff]  }
 0x121   : > { %v3123_v0 = vld [vmem:[%s3736_s30 + $0x444] ss:$16 sps:$4 sm:$0xff]   ;;  %v3126_v39 = vld [vmem:[%s3736_s30 + $0x44c] ss:$16 sps:$4 sm:$0xff]   ;;  %v3121_v3 = vld [vmem:[%s3736_s30 + $0x440] ss:$16 sps:$4 sm:$0xff]  }
 0x122   : > { %v3124_v30 = vld [vmem:[%s3736_s30 + $0x448] ss:$16 sps:$4 sm:$0xff]   ;;  %v3129_v4 = vld [vmem:[%s3736_s30 + $0x464] ss:$16 sps:$4 sm:$0xff]   ;;  %v3132_v5 = vld [vmem:[%s3736_s30 + $0x46c] ss:$16 sps:$4 sm:$0xff]  }
 0x123   : > { %2120 = vmatpush1.bf16.msra.mxu0 %v3043_v14  ;;  %2284 = vmatpush1.bf16.msra.mxu1 %v3046_v19  ;;  %v3127_v14 = vld [vmem:[%s3736_s30 + $0x460] ss:$16 sps:$4 sm:$0xff]   ;;  %v3130_v19 = vld [vmem:[%s3736_s30 + $0x468] ss:$16 sps:$4 sm:$0xff]   ;;  %v3195_v11 = vld [vmem:[%s3736_s30 + $0x5c4] ss:$16 sps:$4 sm:$0xff]  }
 0x124   : > { %2121 = vmatprep.subr.bf16.mxu0 %v3051_v7  ;;  %2285 = vmatprep.subr.bf16.mxu1 %v3054_v8  ;;  %v3135_v7 = vld [vmem:[%s3736_s30 + $0x484] ss:$16 sps:$4 sm:$0xff]   ;;  %v3138_v8 = vld [vmem:[%s3736_s30 + $0x48c] ss:$16 sps:$4 sm:$0xff]   ;;  %v3196_v59 = vld [vmem:[%s3736_s30 + $0x5c8] ss:$16 sps:$4 sm:$0xff]  }
 0x127   : > { %2122 = vmatpush1.bf16.msra.mxu0 %v3049_v9  ;;  %2286 = vmatpush1.bf16.msra.mxu1 %v3052_v10  ;;  %v3133_v9 = vld [vmem:[%s3736_s30 + $0x480] ss:$16 sps:$4 sm:$0xff]   ;;  %v3136_v10 = vld [vmem:[%s3736_s30 + $0x488] ss:$16 sps:$4 sm:$0xff]  }
 0x128   : > { %2123 = vmatprep.subr.bf16.mxu0 %v3057_v12  ;;  %2287 = vmatprep.subr.bf16.mxu1 %v3060_v46  ;;  %v3141_v12 = vld [vmem:[%s3736_s30 + $0x4a4] ss:$16 sps:$4 sm:$0xff]   ;;  %v3144_v46 = vld [vmem:[%s3736_s30 + $0x4ac] ss:$16 sps:$4 sm:$0xff]  }
 0x12b   : > { %2124 = vmatpush1.bf16.msra.mxu0 %v3055_v15  ;;  %2288 = vmatpush1.bf16.msra.mxu1 %v3058_v16  ;;  %v3139_v15 = vld [vmem:[%s3736_s30 + $0x4a0] ss:$16 sps:$4 sm:$0xff]   ;;  %v3142_v16 = vld [vmem:[%s3736_s30 + $0x4a8] ss:$16 sps:$4 sm:$0xff]  }
 0x12c   : > { %2125 = vmatprep.subr.bf16.mxu0 %v3063_v20  ;;  %2289 = vmatprep.subr.bf16.mxu1 %v3066_v22  ;;  %v3147_v20 = vld [vmem:[%s3736_s30 + $0x4c4] ss:$16 sps:$4 sm:$0xff]   ;;  %v3150_v22 = vld [vmem:[%s3736_s30 + $0x4cc] ss:$16 sps:$4 sm:$0xff]  }
 0x12f   : > { %2126 = vmatpush1.bf16.msra.mxu0 %v3061_v23  ;;  %2290 = vmatpush1.bf16.msra.mxu1 %v3064_v28  ;;  %v3145_v23 = vld [vmem:[%s3736_s30 + $0x4c0] ss:$16 sps:$4 sm:$0xff]   ;;  %v3148_v28 = vld [vmem:[%s3736_s30 + $0x4c8] ss:$16 sps:$4 sm:$0xff]  }
 0x130   : > { %2127 = vmatprep.subr.bf16.mxu0 %v3069_v29  ;;  %2291 = vmatprep.subr.bf16.mxu1 %v3072_v31  ;;  %v3153_v29 = vld [vmem:[%s3736_s30 + $0x4e4] ss:$16 sps:$4 sm:$0xff]   ;;  %v3156_v31 = vld [vmem:[%s3736_s30 + $0x4ec] ss:$16 sps:$4 sm:$0xff]  }
 0x133   : > { %2128 = vmatpush1.bf16.msra.mxu0 %v3067_v32  ;;  %2292 = vmatpush1.bf16.msra.mxu1 %v3070_v33  ;;  %v3151_v32 = vld [vmem:[%s3736_s30 + $0x4e0] ss:$16 sps:$4 sm:$0xff]   ;;  %v3154_v33 = vld [vmem:[%s3736_s30 + $0x4e8] ss:$16 sps:$4 sm:$0xff]  }
 0x134   : > { %2129 = vmatprep.subr.bf16.mxu0 %v3075_v34  ;;  %2293 = vmatprep.subr.bf16.mxu1 %v3078_v35  ;;  %v3159_v34 = vld [vmem:[%s3736_s30 + $0x504] ss:$16 sps:$4 sm:$0xff]   ;;  %v3162_v35 = vld [vmem:[%s3736_s30 + $0x50c] ss:$16 sps:$4 sm:$0xff]  }
 0x137   : > { %2130 = vmatpush1.bf16.msra.mxu0 %v3073_v36  ;;  %2294 = vmatpush1.bf16.msra.mxu1 %v3076_v37  ;;  %v3157_v36 = vld [vmem:[%s3736_s30 + $0x500] ss:$16 sps:$4 sm:$0xff]   ;;  %v3160_v37 = vld [vmem:[%s3736_s30 + $0x508] ss:$16 sps:$4 sm:$0xff]  }
 0x138   : > { %2131 = vmatprep.subr.bf16.mxu0 %v3081_v38  ;;  %2295 = vmatprep.subr.bf16.mxu1 %v3084_v41  ;;  %v3165_v38 = vld [vmem:[%s3736_s30 + $0x524] ss:$16 sps:$4 sm:$0xff]   ;;  %v3168_v41 = vld [vmem:[%s3736_s30 + $0x52c] ss:$16 sps:$4 sm:$0xff]  }
 0x13b   : > { %2132 = vmatpush1.bf16.msra.mxu0 %v3079_v42  ;;  %2296 = vmatpush1.bf16.msra.mxu1 %v3082_v43  ;;  %v3163_v42 = vld [vmem:[%s3736_s30 + $0x520] ss:$16 sps:$4 sm:$0xff]   ;;  %v3166_v43 = vld [vmem:[%s3736_s30 + $0x528] ss:$16 sps:$4 sm:$0xff]  }
 0x13c   : > { %2133 = vmatprep.subr.bf16.mxu0 %v3087_v1  ;;  %2297 = vmatprep.subr.bf16.mxu1 %v3090_v44  ;;  %v3171_v1 = vld [vmem:[%s3736_s30 + $0x544] ss:$16 sps:$4 sm:$0xff]   ;;  %v3174_v44 = vld [vmem:[%s3736_s30 + $0x54c] ss:$16 sps:$4 sm:$0xff]  }
 0x13f   : > { %2134 = vmatpush1.bf16.msra.mxu0 %v3085_v2  ;;  %2298 = vmatpush1.bf16.msra.mxu1 %v3088_v17  ;;  %v3169_v2 = vld [vmem:[%s3736_s30 + $0x540] ss:$16 sps:$4 sm:$0xff]   ;;  %v3172_v17 = vld [vmem:[%s3736_s30 + $0x548] ss:$16 sps:$4 sm:$0xff]  }
 0x140   : > { %2135 = vmatprep.subr.bf16.mxu0 %v3093_v18  ;;  %2299 = vmatprep.subr.bf16.mxu1 %v3096_v45  ;;  %v3177_v18 = vld [vmem:[%s3736_s30 + $0x564] ss:$16 sps:$4 sm:$0xff]   ;;  %v3180_v45 = vld [vmem:[%s3736_s30 + $0x56c] ss:$16 sps:$4 sm:$0xff]  }
 0x143   : > { %2136 = vmatpush1.bf16.msra.mxu0 %v3091_v47  ;;  %2300 = vmatpush1.bf16.msra.mxu1 %v3094_v48  ;;  %v3175_v47 = vld [vmem:[%s3736_s30 + $0x560] ss:$16 sps:$4 sm:$0xff]   ;;  %v3178_v48 = vld [vmem:[%s3736_s30 + $0x568] ss:$16 sps:$4 sm:$0xff]  }
 0x144   : > { %2137 = vmatprep.subr.bf16.mxu0 %v3099_v49  ;;  %2301 = vmatprep.subr.bf16.mxu1 %v3102_v50  ;;  %v3183_v49 = vld [vmem:[%s3736_s30 + $0x584] ss:$16 sps:$4 sm:$0xff]   ;;  %v3186_v50 = vld [vmem:[%s3736_s30 + $0x58c] ss:$16 sps:$4 sm:$0xff]  }
 0x147   : > { %2138 = vmatpush1.bf16.msra.mxu0 %v3097_v51  ;;  %2302 = vmatpush1.bf16.msra.mxu1 %v3100_v52  ;;  %v3181_v51 = vld [vmem:[%s3736_s30 + $0x580] ss:$16 sps:$4 sm:$0xff]   ;;  %v3184_v52 = vld [vmem:[%s3736_s30 + $0x588] ss:$16 sps:$4 sm:$0xff]  }
 0x148   : > { %2139 = vmatprep.subr.bf16.mxu0 %v3105_v53  ;;  %2303 = vmatprep.subr.bf16.mxu1 %v3108_v54  ;;  %v3189_v53 = vld [vmem:[%s3736_s30 + $0x5a4] ss:$16 sps:$4 sm:$0xff]   ;;  %v3192_v54 = vld [vmem:[%s3736_s30 + $0x5ac] ss:$16 sps:$4 sm:$0xff]  }
 0x14b   : > { %2140 = vmatpush1.bf16.msra.mxu0 %v3103_v55  ;;  %2304 = vmatpush1.bf16.msra.mxu1 %v3106_v56  ;;  %v3187_v55 = vld [vmem:[%s3736_s30 + $0x5a0] ss:$16 sps:$4 sm:$0xff]   ;;  %v3190_v56 = vld [vmem:[%s3736_s30 + $0x5a8] ss:$16 sps:$4 sm:$0xff]  }
 0x14c   : > { %2150 = vmatprep.subr.bf16.mxu0 %v3111_v57  ;;  %2314 = vmatprep.subr.bf16.mxu1 %v3114_v58  ;;  %v3198_v57 = vld [vmem:[%s3736_s30 + $0x5cc] ss:$16 sps:$4 sm:$0xff]   ;;  %v3193_v58 = vld [vmem:[%s3736_s30 + $0x5c0] ss:$16 sps:$4 sm:$0xff]  }
 0x14e   : > { %2142 = vmatmul.mubr.bf16.vlgmr.msra.gmra.mrb[0].mxu0 %v504_v26  ;;  %2306 = vmatmul.mubr.bf16.vlgmr.msra.gmra.mrb[0].mxu1 %v504_v26  ;;  %v3199_v26 = vld [vmem:[%s3736_s30 + $0x5e0] ss:$16 sps:$4 sm:$0xff]  }
 0x14f   : > { %2151 = vmatpush1.bf16.msra.mxu0 %v3109_v40  ;;  %2315 = vmatpush1.bf16.msra.mxu1 %v3112_v27  ;;  %v3201_v40 = vld [vmem:[%s3736_s30 + $0x5e4] ss:$16 sps:$4 sm:$0xff]   ;;  %v3204_v27 = vld [vmem:[%s3736_s30 + $0x5ec] ss:$16 sps:$4 sm:$0xff]  }
 0x150   : > { %2152 = vmatprep.subr.bf16.mxu0 %v3117_v60  ;;  %2316 = vmatprep.subr.bf16.mxu1 %v3120_v62  ;;  %v3202_v60 = vld [vmem:[%s3736_s30 + $0x5e8] ss:$16 sps:$4 sm:$0xff]   ;;  %v498_v62 = vmax.f32 %v3961_v21, 0.0  ;;  %v3213_v21 = vld [vmem:[%s3736_s30 + $0x624] ss:$16 sps:$4 sm:$0xff]  }
 0x151   : > { %2182 = vmatprep.mubr.bf16.mxu0 %v507_v24  ;;  %2346 = vmatprep.mubr.bf16.mxu1 %v507_v24  ;;  %v3207_v24 = vld [vmem:[%s3736_s30 + $0x604] ss:$16 sps:$4 sm:$0xff]  }
 0x153   : > { %2153 = vmatpush1.bf16.msra.mxu0 %v3115_v61  ;;  %2317 = vmatpush1.bf16.msra.mxu1 %v3118_v63  ;;  %v3210_v61 = vld [vmem:[%s3736_s30 + $0x60c] ss:$16 sps:$4 sm:$0xff]   ;;  %v501_v63 = vmax.f32 %v3985_v13, 0.0  ;;  %v3211_v13 = vld [vmem:[%s3736_s30 + $0x620] ss:$16 sps:$4 sm:$0xff]  }
 0x154   : > { %2154 = vmatprep.subr.bf16.mxu0 %v3123_v0  ;;  %2318 = vmatprep.subr.bf16.mxu1 %v3126_v39  ;;  %v3205_v0 = vld [vmem:[%s3736_s30 + $0x600] ss:$16 sps:$4 sm:$0xff]   ;;  %v506_v39 = vpack.c.bf16 %v498_v62, %v498_v62 }
 0x155   : > { %v3289_v62 = vld [vmem:[%s3736_s30 + $0x7c0] ss:$16 sps:$4 sm:$0xff]  }
 0x157   : > { %2155 = vmatpush1.bf16.msra.mxu0 %v3121_v3  ;;  %2319 = vmatpush1.bf16.msra.mxu1 %v3124_v30  ;;  %v3208_v3 = vld [vmem:[%s3736_s30 + $0x608] ss:$16 sps:$4 sm:$0xff]   ;;  %v509_v30 = vpack.c.bf16 %v501_v63, %v501_v63  ;;  %v3300_v63 = vld [vmem:[%s3736_s30 + $0x7ec] ss:$16 sps:$4 sm:$0xff]  }
 0x158   : > { %2156 = vmatprep.subr.bf16.mxu0 %v3129_v4  ;;  %2320 = vmatprep.subr.bf16.mxu1 %v3132_v5  ;;  %v3216_v4 = vld [vmem:[%s3736_s30 + $0x62c] ss:$16 sps:$4 sm:$0xff]   ;;  %v3214_v5 = vld [vmem:[%s3736_s30 + $0x628] ss:$16 sps:$4 sm:$0xff]  }
 0x15b   : > { %2157 = vmatpush1.bf16.msra.mxu0 %v3127_v14  ;;  %2321 = vmatpush1.bf16.msra.mxu1 %v3130_v19  ;;  %v3219_v14 = vld [vmem:[%s3736_s30 + $0x644] ss:$16 sps:$4 sm:$0xff]   ;;  %v3222_v19 = vld [vmem:[%s3736_s30 + $0x64c] ss:$16 sps:$4 sm:$0xff]  }
 0x15c   : > { %2158 = vmatprep.subr.bf16.mxu0 %v3135_v7  ;;  %2322 = vmatprep.subr.bf16.mxu1 %v3138_v8  ;;  %v3217_v7 = vld [vmem:[%s3736_s30 + $0x640] ss:$16 sps:$4 sm:$0xff]   ;;  %v3220_v8 = vld [vmem:[%s3736_s30 + $0x648] ss:$16 sps:$4 sm:$0xff]  }
 0x15f   : > { %2159 = vmatpush1.bf16.msra.mxu0 %v3133_v9  ;;  %2323 = vmatpush1.bf16.msra.mxu1 %v3136_v10  ;;  %v3225_v9 = vld [vmem:[%s3736_s30 + $0x664] ss:$16 sps:$4 sm:$0xff]   ;;  %v3228_v10 = vld [vmem:[%s3736_s30 + $0x66c] ss:$16 sps:$4 sm:$0xff]  }
 0x160   : > { %2160 = vmatprep.subr.bf16.mxu0 %v3141_v12  ;;  %2324 = vmatprep.subr.bf16.mxu1 %v3144_v46  ;;  %v3223_v12 = vld [vmem:[%s3736_s30 + $0x660] ss:$16 sps:$4 sm:$0xff]   ;;  %v3226_v46 = vld [vmem:[%s3736_s30 + $0x668] ss:$16 sps:$4 sm:$0xff]  }
 0x163   : > { %2161 = vmatpush1.bf16.msra.mxu0 %v3139_v15  ;;  %2325 = vmatpush1.bf16.msra.mxu1 %v3142_v16  ;;  %v3231_v15 = vld [vmem:[%s3736_s30 + $0x684] ss:$16 sps:$4 sm:$0xff]   ;;  %v3234_v16 = vld [vmem:[%s3736_s30 + $0x68c] ss:$16 sps:$4 sm:$0xff]  }
 0x164   : > { %2162 = vmatprep.subr.bf16.mxu0 %v3147_v20  ;;  %2326 = vmatprep.subr.bf16.mxu1 %v3150_v22  ;;  %v3229_v20 = vld [vmem:[%s3736_s30 + $0x680] ss:$16 sps:$4 sm:$0xff]   ;;  %v3232_v22 = vld [vmem:[%s3736_s30 + $0x688] ss:$16 sps:$4 sm:$0xff]  }
 0x167   : > { %2163 = vmatpush1.bf16.msra.mxu0 %v3145_v23  ;;  %2327 = vmatpush1.bf16.msra.mxu1 %v3148_v28  ;;  %v3237_v23 = vld [vmem:[%s3736_s30 + $0x6a4] ss:$16 sps:$4 sm:$0xff]   ;;  %v3240_v28 = vld [vmem:[%s3736_s30 + $0x6ac] ss:$16 sps:$4 sm:$0xff]  }
 0x168   : > { %2164 = vmatprep.subr.bf16.mxu0 %v3153_v29  ;;  %2328 = vmatprep.subr.bf16.mxu1 %v3156_v31  ;;  %v3235_v29 = vld [vmem:[%s3736_s30 + $0x6a0] ss:$16 sps:$4 sm:$0xff]   ;;  %v3238_v31 = vld [vmem:[%s3736_s30 + $0x6a8] ss:$16 sps:$4 sm:$0xff]  }
 0x16b   : > { %2165 = vmatpush1.bf16.msra.mxu0 %v3151_v32  ;;  %2329 = vmatpush1.bf16.msra.mxu1 %v3154_v33  ;;  %v3243_v32 = vld [vmem:[%s3736_s30 + $0x6c4] ss:$16 sps:$4 sm:$0xff]   ;;  %v3246_v33 = vld [vmem:[%s3736_s30 + $0x6cc] ss:$16 sps:$4 sm:$0xff]  }
 0x16c   : > { %2166 = vmatprep.subr.bf16.mxu0 %v3159_v34  ;;  %2330 = vmatprep.subr.bf16.mxu1 %v3162_v35  ;;  %v3241_v34 = vld [vmem:[%s3736_s30 + $0x6c0] ss:$16 sps:$4 sm:$0xff]   ;;  %v3244_v35 = vld [vmem:[%s3736_s30 + $0x6c8] ss:$16 sps:$4 sm:$0xff]  }
 0x16f   : > { %2167 = vmatpush1.bf16.msra.mxu0 %v3157_v36  ;;  %2331 = vmatpush1.bf16.msra.mxu1 %v3160_v37  ;;  %v3249_v36 = vld [vmem:[%s3736_s30 + $0x6e4] ss:$16 sps:$4 sm:$0xff]   ;;  %v3252_v37 = vld [vmem:[%s3736_s30 + $0x6ec] ss:$16 sps:$4 sm:$0xff]  }
 0x170   : > { %2168 = vmatprep.subr.bf16.mxu0 %v3165_v38  ;;  %2332 = vmatprep.subr.bf16.mxu1 %v3168_v41  ;;  %v3247_v38 = vld [vmem:[%s3736_s30 + $0x6e0] ss:$16 sps:$4 sm:$0xff]   ;;  %v3250_v41 = vld [vmem:[%s3736_s30 + $0x6e8] ss:$16 sps:$4 sm:$0xff]  }
 0x173   : > { %2169 = vmatpush1.bf16.msra.mxu0 %v3163_v42  ;;  %2333 = vmatpush1.bf16.msra.mxu1 %v3166_v43  ;;  %v3255_v42 = vld [vmem:[%s3736_s30 + $0x704] ss:$16 sps:$4 sm:$0xff]   ;;  %v3258_v43 = vld [vmem:[%s3736_s30 + $0x70c] ss:$16 sps:$4 sm:$0xff]  }
 0x174   : > { %2170 = vmatprep.subr.bf16.mxu0 %v3171_v1  ;;  %2334 = vmatprep.subr.bf16.mxu1 %v3174_v44  ;;  %v3253_v1 = vld [vmem:[%s3736_s30 + $0x700] ss:$16 sps:$4 sm:$0xff]   ;;  %v3256_v44 = vld [vmem:[%s3736_s30 + $0x708] ss:$16 sps:$4 sm:$0xff]  }
 0x177   : > { %2171 = vmatpush1.bf16.msra.mxu0 %v3169_v2  ;;  %2335 = vmatpush1.bf16.msra.mxu1 %v3172_v17  ;;  %v3261_v2 = vld [vmem:[%s3736_s30 + $0x724] ss:$16 sps:$4 sm:$0xff]   ;;  %v3264_v17 = vld [vmem:[%s3736_s30 + $0x72c] ss:$16 sps:$4 sm:$0xff]  }
 0x178   : > { %2172 = vmatprep.subr.bf16.mxu0 %v3177_v18  ;;  %2336 = vmatprep.subr.bf16.mxu1 %v3180_v45  ;;  %v3259_v18 = vld [vmem:[%s3736_s30 + $0x720] ss:$16 sps:$4 sm:$0xff]   ;;  %v3262_v45 = vld [vmem:[%s3736_s30 + $0x728] ss:$16 sps:$4 sm:$0xff]  }
 0x17b   : > { %2173 = vmatpush1.bf16.msra.mxu0 %v3175_v47  ;;  %2337 = vmatpush1.bf16.msra.mxu1 %v3178_v48  ;;  %v3267_v47 = vld [vmem:[%s3736_s30 + $0x744] ss:$16 sps:$4 sm:$0xff]   ;;  %v3270_v48 = vld [vmem:[%s3736_s30 + $0x74c] ss:$16 sps:$4 sm:$0xff]  }
 0x17c   : > { %2174 = vmatprep.subr.bf16.mxu0 %v3183_v49  ;;  %2338 = vmatprep.subr.bf16.mxu1 %v3186_v50  ;;  %v3265_v49 = vld [vmem:[%s3736_s30 + $0x740] ss:$16 sps:$4 sm:$0xff]   ;;  %v3268_v50 = vld [vmem:[%s3736_s30 + $0x748] ss:$16 sps:$4 sm:$0xff]  }
 0x17f   : > { %2175 = vmatpush1.bf16.msra.mxu0 %v3181_v51  ;;  %2339 = vmatpush1.bf16.msra.mxu1 %v3184_v52  ;;  %v3273_v51 = vld [vmem:[%s3736_s30 + $0x764] ss:$16 sps:$4 sm:$0xff]   ;;  %v3276_v52 = vld [vmem:[%s3736_s30 + $0x76c] ss:$16 sps:$4 sm:$0xff]  }
 0x180   : > { %2176 = vmatprep.subr.bf16.mxu0 %v3189_v53  ;;  %2340 = vmatprep.subr.bf16.mxu1 %v3192_v54  ;;  %v3271_v53 = vld [vmem:[%s3736_s30 + $0x760] ss:$16 sps:$4 sm:$0xff]   ;;  %v3274_v54 = vld [vmem:[%s3736_s30 + $0x768] ss:$16 sps:$4 sm:$0xff]  }
 0x183   : > { %2177 = vmatpush1.bf16.msra.mxu0 %v3187_v55  ;;  %2341 = vmatpush1.bf16.msra.mxu1 %v3190_v56  ;;  %v3279_v55 = vld [vmem:[%s3736_s30 + $0x784] ss:$16 sps:$4 sm:$0xff]   ;;  %v3282_v56 = vld [vmem:[%s3736_s30 + $0x78c] ss:$16 sps:$4 sm:$0xff]  }
 0x184   : > { %2178 = vmatprep.subr.bf16.mxu0 %v3195_v11  ;;  %2342 = vmatprep.subr.bf16.mxu1 %v3198_v57  ;;  %v3277_v11 = vld [vmem:[%s3736_s30 + $0x780] ss:$16 sps:$4 sm:$0xff]   ;;  %v3280_v57 = vld [vmem:[%s3736_s30 + $0x788] ss:$16 sps:$4 sm:$0xff]  }
 0x187   : > { %2179 = vmatpush1.bf16.msra.mxu0 %v3193_v58  ;;  %2343 = vmatpush1.bf16.msra.mxu1 %v3196_v59  ;;  %v3285_v58 = vld [vmem:[%s3736_s30 + $0x7a4] ss:$16 sps:$4 sm:$0xff]   ;;  %v3288_v59 = vld [vmem:[%s3736_s30 + $0x7ac] ss:$16 sps:$4 sm:$0xff]  }
 0x188   : > { %2180 = vmatprep.subr.bf16.mxu0 %v3201_v40  ;;  %2344 = vmatprep.subr.bf16.mxu1 %v3204_v27  ;;  %v3283_v40 = vld [vmem:[%s3736_s30 + $0x7a0] ss:$16 sps:$4 sm:$0xff]   ;;  %v3286_v27 = vld [vmem:[%s3736_s30 + $0x7a8] ss:$16 sps:$4 sm:$0xff]  }
 0x18b   : > { %2181 = vmatpush1.bf16.msra.mxu0 %v3199_v26  ;;  %2345 = vmatpush1.bf16.msra.mxu1 %v3202_v60  ;;  %v3291_v26 = vld [vmem:[%s3736_s30 + $0x7c4] ss:$16 sps:$4 sm:$0xff]   ;;  %v3294_v60 = vld [vmem:[%s3736_s30 + $0x7cc] ss:$16 sps:$4 sm:$0xff]  }
 0x18c   : > { %2191 = vmatprep.subr.bf16.mxu0 %v3207_v24  ;;  %2355 = vmatprep.subr.bf16.mxu1 %v3210_v61  ;;  %v3292_v24 = vld [vmem:[%s3736_s30 + $0x7c8] ss:$16 sps:$4 sm:$0xff]   ;;  %v3297_v61 = vld [vmem:[%s3736_s30 + $0x7e4] ss:$16 sps:$4 sm:$0xff]  }
 0x18e   : > { %2183 = vmatmul.mubr.bf16.vlgmr.msra.gmra.mrb[0].mxu0 %v506_v39  ;;  %2347 = vmatmul.mubr.bf16.vlgmr.msra.gmra.mrb[0].mxu1 %v506_v39  ;;  %v3298_v39 = vld [vmem:[%s3736_s30 + $0x7e8] ss:$16 sps:$4 sm:$0xff]  }
 0x18f   : > { %2192 = vmatpush1.bf16.msra.mxu0 %v3205_v0  ;;  %2223 = vmatprep.mubr.bf16.mxu0 %v509_v30  ;;  %v3295_v0 = vld [vmem:[%s3736_s30 + $0x7e0] ss:$16 sps:$4 sm:$0xff]   ;;  %s3406_s30 = sshll.u32 %s3487_s27, 4  ;;  %s3407_s30 = int_to_ptr.vmem [resolvable:$false] %s3406_s30 }
 0x190   : > { %2356 = vmatpush1.bf16.msra.mxu1 %v3208_v3  ;;  %2387 = vmatprep.mubr.bf16.mxu1 %v509_v30  ;;  %v500_v3 = vmax.f32 %v3982_v6, 0.0  ;;  %s3408_s24 = scalar_lea.vmem %s3407_s30, 1024  ;;  %p3409_p10 = scmp.lt.s32.totalorder %s4169_s15, %s3407_s30 }
 0x191   : > { %2193 = vmatprep.subr.bf16.mxu0 %v3213_v21  ;;  %2357 = vmatprep.subr.bf16.mxu1 %v3216_v4  ;;  %v769_v21 = vshrl.u32 %v315_v25, 7  ;;  %p3410_p1 = scmp.lt.s32.totalorder %s3408_s24, %s3402_s14 }
 0x192   : > { %v508_v30 = vpack.c.bf16 %v500_v3, %v500_v3 }
 0x193   : > { %2194 = vmatpush1.bf16.msra.mxu0 %v3211_v13  ;;  %v770_v4 = vsub.s32 0, %v769_v21  ;;  %v766_v13 = vld [vmem:[%s3743_s26] sm:$0xf]  ;;  %p3411_p5 = por %p3410_p1, %p3409_p10 }
 0x194   : > { %2358 = vmatpush1.bf16.msra.mxu1 %v3214_v5  ;;  %2195 = vmatprep.subr.bf16.mxu0 %v3219_v14  ;;  %v778_v5 = vsub.s32 2, %v769_v21  ;;  %v774_v14 = vsub.s32 1, %v769_v21 }
 0x195   : > { %2359 = vmatprep.subr.bf16.mxu1 %v3222_v19  ;;  %v782_v19 = vsub.s32 3, %v769_v21  ;;  %p3412_p9 = pnand %p3411_p5, %p3405_p8 }
 0x197   : > { %2196 = vmatpush1.bf16.msra.mxu0 %v3217_v7  ;;  %v771_v7 = vrot.slane %v766_v13, %v770_v4 }
 0x198   : > { %2360 = vmatpush1.bf16.msra.mxu1 %v3220_v8  ;;  %2197 = vmatprep.subr.bf16.mxu0 %v3225_v9  ;;  %v779_v8 = vrot.slane %v766_v13, %v778_v5  ;;  %v775_v9 = vrot.slane %v766_v13, %v774_v14 }
 0x199   : > { %2361 = vmatprep.subr.bf16.mxu1 %v3228_v10  ;;  %v783_v10 = vrot.slane %v766_v13, %v782_v19 }
 0x19b   : > { %2198 = vmatpush1.bf16.msra.mxu0 %v3223_v12 }
 0x19c   : > { %2362 = vmatpush1.bf16.msra.mxu1 %v3226_v46  ;;  %2199 = vmatprep.subr.bf16.mxu0 %v3231_v15 }
 0x19d   : > { %2363 = vmatprep.subr.bf16.mxu1 %v3234_v16 }
 0x19f   : > { %2200 = vmatpush1.bf16.msra.mxu0 %v3229_v20 }
 0x1a0   : > { %2364 = vmatpush1.bf16.msra.mxu1 %v3232_v22  ;;  %2201 = vmatprep.subr.bf16.mxu0 %v3237_v23 }
 0x1a1   : > { %2365 = vmatprep.subr.bf16.mxu1 %v3240_v28 }
 0x1a3   : > { %2202 = vmatpush1.bf16.msra.mxu0 %v3235_v29 }
 0x1a4   : > { %2366 = vmatpush1.bf16.msra.mxu1 %v3238_v31  ;;  %2203 = vmatprep.subr.bf16.mxu0 %v3243_v32 }
 0x1a5   : > { %2367 = vmatprep.subr.bf16.mxu1 %v3246_v33 }
 0x1a7   : > { %2204 = vmatpush1.bf16.msra.mxu0 %v3241_v34 }
 0x1a8   : > { %2368 = vmatpush1.bf16.msra.mxu1 %v3244_v35  ;;  %2205 = vmatprep.subr.bf16.mxu0 %v3249_v36 }
 0x1a9   : > { %2369 = vmatprep.subr.bf16.mxu1 %v3252_v37 }
 0x1ab   : > { %2206 = vmatpush1.bf16.msra.mxu0 %v3247_v38 }
 0x1ac   : > { %2370 = vmatpush1.bf16.msra.mxu1 %v3250_v41  ;;  %2207 = vmatprep.subr.bf16.mxu0 %v3255_v42 }
 0x1ad   : > { %2371 = vmatprep.subr.bf16.mxu1 %v3258_v43 }
 0x1af   : > { %2208 = vmatpush1.bf16.msra.mxu0 %v3253_v1 }
 0x1b0   : > { %2372 = vmatpush1.bf16.msra.mxu1 %v3256_v44  ;;  %2209 = vmatprep.subr.bf16.mxu0 %v3261_v2 }
 0x1b1   : > { %2373 = vmatprep.subr.bf16.mxu1 %v3264_v17 }
 0x1b3   : > { %2210 = vmatpush1.bf16.msra.mxu0 %v3259_v18 }
 0x1b4   : > { %2374 = vmatpush1.bf16.msra.mxu1 %v3262_v45  ;;  %2211 = vmatprep.subr.bf16.mxu0 %v3267_v47 }
 0x1b5   : > { %2375 = vmatprep.subr.bf16.mxu1 %v3270_v48 }
 0x1b7   : > { %2212 = vmatpush1.bf16.msra.mxu0 %v3265_v49 }
 0x1b8   : > { %2376 = vmatpush1.bf16.msra.mxu1 %v3268_v50  ;;  %2213 = vmatprep.subr.bf16.mxu0 %v3273_v51 }
 0x1b9   : > { %2377 = vmatprep.subr.bf16.mxu1 %v3276_v52 }
 0x1bb   : > { %2214 = vmatpush1.bf16.msra.mxu0 %v3271_v53 }
 0x1bc   : > { %2378 = vmatpush1.bf16.msra.mxu1 %v3274_v54  ;;  %2215 = vmatprep.subr.bf16.mxu0 %v3279_v55 }
 0x1bd   : > { %2379 = vmatprep.subr.bf16.mxu1 %v3282_v56 }
 0x1bf   : > { %2216 = vmatpush1.bf16.msra.mxu0 %v3277_v11 }
 0x1c0   : > { %2380 = vmatpush1.bf16.msra.mxu1 %v3280_v57  ;;  %2217 = vmatprep.subr.bf16.mxu0 %v3285_v58 }
 0x1c1   : > { %2381 = vmatprep.subr.bf16.mxu1 %v3288_v59 }
 0x1c3   : > { %2218 = vmatpush1.bf16.msra.mxu0 %v3283_v40 }
 0x1c4   : > { %2382 = vmatpush1.bf16.msra.mxu1 %v3286_v27  ;;  %2219 = vmatprep.subr.bf16.mxu0 %v3291_v26 }
 0x1c5   : > { %2383 = vmatprep.subr.bf16.mxu1 %v3294_v60 }
 0x1c7   : > { %2220 = vmatpush1.bf16.msra.mxu0 %v3289_v62 }
 0x1c8   : > { %2384 = vmatpush1.bf16.msra.mxu1 %v3292_v24  ;;  %2221 = vmatprep.subr.bf16.mxu0 %v3297_v61 }
 0x1c9   : > { %2385 = vmatprep.subr.bf16.mxu1 %v3300_v63 }
 0x1cb   : > { %2222 = vmatpush1.bf16.msra.mxu0 %v3295_v0 }
 0x1cc   : > { %2386 = vmatpush1.bf16.msra.mxu1 %v3298_v39 }
 0x1ce   : > { %2224 = vmatmul.mubr.bf16.vlgmr.msra.gmra.mrb[0].mxu0 %v508_v30 }
 0x1cf   : > { %2388 = vmatmul.mubr.bf16.vlgmr.msra.gmra.mrb[0].mxu1 %v508_v30 }
 0x2a1   : > { %v2225_v6 = vpop.f32.mrb[0].mxu0 }
 0x2a2   : > { %v2812_v12 = vadd.f32 %v2225_v6, %v771_v7  ;;  %v2389_v46 = vpop.f32.mrb[0].mxu1  ;;  %v2227_v15 = vpop.f32.mrb[1].mxu0 }
 0x2a3   : > { %v2814_v16 = vadd.f32 %v2389_v46, %v779_v8  ;;  %v2813_v25 = vadd.f32 %v2227_v15, %v775_v9  ;;  %v2391_v20 = vpop.f32.mrb[1].mxu1  ;;  %v2229_v22 = vpop.f32.mrb[2].mxu0 }
 0x2a4   : > { %2396 = vst [vmem:[%s303_s16] sm:$0xff] %v2812_v12  ;;  %v2815_v23 = vadd.f32 %v2391_v20, %v783_v10  ;;  %v2393_v28 = vpop.f32.mrb[2].mxu1  ;;  %v2230_v29 = vpop.f32.mrb[3].mxu0 }
 0x2a5   : > { %2398 = vst [vmem:[%s303_s16 + $0x10] sm:$0xff] %v2814_v16  ;;  %2397 = vst [vmem:[%s303_s16 + $0x8] sm:$0xff] %v2813_v25  ;;  %v2394_v31 = vpop.f32.mrb[3].mxu1 }
 0x2a6   : > { %2399 = vst [vmem:[%s303_s16 + $0x18] sm:$0xff] %v2815_v23 }
 0x2a7   : > { %3415 = shalt.err (!%p3412_p9)
}
 0x2a8   : > { %s3416_s12 = scalar_lea.hbm %s4167_s11, 512  ;;  %s3420_s25 = scalar_lea.hbm %s4216_s5, 1024 }
 0x2a9   : > { %p3417_p4 = scmp.ne.s32.totalorder %s4167_s11, %s3416_s12  ;;  %p3421_p13 = scmp.lt.u32.totalorder %s4167_s11, %s4216_s5 }
 0x2aa   : > { %p3422_p3 = scmp.lt.u32.totalorder %s3420_s25, %s3416_s12  ;;  %p3424_p12 = scmp.lt.u32.totalorder %s3416_s12, %s4167_s11 }
 0x2ab   : > { %p3418_p7 = pnand %p3417_p4, %p4237_p0 }
 0x2ac   : > { %p3423_p6 = por %p3422_p3, %p3421_p13 }
 0x2ad   : > { %p3419_p11 = pneg %p3418_p7 }
 0x2ae   : > { %p3425_p2 = por %p3424_p12, %p3423_p6 }
 0x2b0   : > { %p3426_p8 = pnand %p3425_p2, %p3419_p11 }
 0x2b2   : > { %3429 = shalt.err (!%p3426_p8)
}
 0x2b3   : > { %2852 = dma.vmem_to_hbm [thread:$0]  (%p4237_p0), %s4169_s15, 512, %s4167_s11, %s2401_s7  }
 0x2b4 PF: > { %s2427_s3 = sand.u32 1, %s3464_s20   ;;  %p4238_p10 = scmp.ne.s32.totalorder %s4227_s10, 0 }
 0x2b5   : > { %p4239_p1 = scmp.ge.s32.totalorder %s3476_s23, 2  ;;  %s2428_s19 = scalar_lea.sflag [#allocation5], %s2427_s3 }
 0x2b7   : > { %p2869_p5 = pnand %p4239_p1, %p4238_p10 }
 0x2b9   : > { %3459 = dma.done.wait (!%p2869_p5), %s2428_s19, 512  }
 0x2ba   : > { %3461 = vsyncadd (!%p2869_p5), %s2428_s19, 4294966784  ;;  %s4240_s28 = sld [smem:[#allocation16_spill]]  ;;  %p21_p9 = scmp.ge.s32.totalorder %s3542_s1, 4  }
 0x2bb   : > { %s4241_s20 = smov %s3468_s21  ;;  %s4242_s21 = smov %s3472_s22 }
 0x2bc   : > { %s4244_s23 = smov %s3542_s1  ;;  %23 = sbr.rel (!%p21_p9) target bundleno = 10 (0xa), region = 106 }
 0x2c0   : > { %s4243_s22 = smov %s4240_s28 }
 0x2c3   :  { %2433 = vsyncpa [#allocation4], 1 }
 0x2c4   :  { %2435 = vsyncpa [#allocation4 + $0x1], 1 }
 0x2c5   :  { %2436 = vsyncpa [#allocation9], 1 }
 0x2c6   :  { %2438 = vsyncpa [#allocation9 + $0x1], 1 }
 0x2c7   :  { %2439 = vsyncpa [#allocation5], 1 }
 0x2c8   :  { %2441 = vsyncpa [#allocation5 + $0x1], 1 }
 0x2c9   :  { %2442 = vsyncpa [#allocation6], 1 }
 0x2ca   :  { %2444 = vsyncpa [#allocation6 + $0x1], 1 }

</bundles_post_ra>
